<compile_context>
chip_gen: v7x
topology: tpu7x:2x2x1
jax: 0.10.0
libtpu: 0.0.40
codegen_flags: <defaults>
</compile_context>

<pallas_src>
import numpy as np
import jax
import jax.numpy as jnp
from jax import lax
from jax.experimental import pallas as pl
from jax.experimental.pallas import tpu as pltpu

# ---- small synthetic CLIP text-encoder hyper-parameters --------------------
B = 2        # batch
S = 8        # context length
D = 32       # transformer width
H = 4        # attention heads
HD = D // H  # head dim
FF = 4 * D   # MLP hidden
L = 2        # transformer layers
V = 64       # vocab size
E = 32       # text_projection output dim
BS = B * S


# ---------------------------------------------------------------------------
# In-kernel helpers
# ---------------------------------------------------------------------------
def _layernorm(x, w, b, eps=1e-5):
    mu = jnp.mean(x, axis=-1, keepdims=True)
    xc = x - mu
    var = jnp.mean(xc * xc, axis=-1, keepdims=True)
    return xc * lax.rsqrt(var + eps) * w + b


# ---------------------------------------------------------------------------
# Fused Pallas kernel: embedding + L residual attn blocks + ln_final + EOT + proj
# ---------------------------------------------------------------------------
def fused_kernel(text_ref, eot_ref, tok_ref, pos_ref, hm_ref, mask_ref,
                 ln1w_ref, ln1b_ref, wq_ref, bq_ref, wk_ref, bk_ref,
                 wv_ref, bv_ref, wo_ref, bo_ref, ln2w_ref, ln2b_ref,
                 wfc_ref, bfc_ref, wpr_ref, bpr_ref,
                 lnfw_ref, lnfb_ref, proj_ref,
                 word_ref, tx_ref):
    # ---- token embedding gather (one-hot MXU matmul) + positional add ----
    tok_ids = text_ref[...]                                          # (BS, 1) int32
    tok_oh = (lax.broadcasted_iota(jnp.int32, (BS, V), 1)
              == tok_ids).astype(jnp.float32)                        # (BS, V)
    x = jnp.dot(tok_oh, tok_ref[...],
                preferred_element_type=jnp.float32) + pos_ref[...]   # (BS, D)

    attn_mask = mask_ref[...]                                        # (BS, BS) block-diag causal
    head_masks = [hm_ref[h] for h in range(H)]                       # each (1, D), hoisted

    for l in range(L):                                               # unrolled (L = 2)
        # ---- multi-head self-attention: heads kept in lanes, zero relayouts ----
        hln = _layernorm(x, ln1w_ref[l], ln1b_ref[l])
        # wq / bq are pre-scaled by 1/sqrt(HD) host-side.
        q = jnp.dot(hln, wq_ref[l], preferred_element_type=jnp.float32) + bq_ref[l]
        k = jnp.dot(hln, wk_ref[l], preferred_element_type=jnp.float32) + bk_ref[l]
        v = jnp.dot(hln, wv_ref[l], preferred_element_type=jnp.float32) + bv_ref[l]

        o = None
        for h in range(H):                                           # static, H = 4
            # masking Q's non-head columns makes the full-D contraction equal the
            # per-head contraction; the mask also handles batch separation.
            qh = q * head_masks[h]
            s = lax.dot_general(qh, k, (((1,), (1,)), ((), ())),
                                preferred_element_type=jnp.float32) + attn_mask
            m = jnp.max(s, axis=-1, keepdims=True)
            p = jnp.exp(s - m)
            p = p * pl.reciprocal(jnp.sum(p, axis=-1, keepdims=True), approx=False)
            # masked V places this head's output in its own column block.
            oh = jnp.dot(p, v * head_masks[h], preferred_element_type=jnp.float32)
            o = oh if o is None else o + oh                          # (BS, D)

        # head merge = ONE matmul against the un-reshaped out-proj weight
        x = x + jnp.dot(o, wo_ref[l], preferred_element_type=jnp.float32) + bo_ref[l]

        # ---- MLP (Linear -> QuickGELU -> Linear), whole batch at once ----
        h2 = _layernorm(x, ln2w_ref[l], ln2b_ref[l])
        fc = jnp.dot(h2, wfc_ref[l], preferred_element_type=jnp.float32) + bfc_ref[l]
        g = fc * jax.nn.sigmoid(1.702 * fc)                          # QuickGELU
        x = x + jnp.dot(g, wpr_ref[l], preferred_element_type=jnp.float32) + bpr_ref[l]

    # ---- ln_final + word_emb output ----
    y = _layernorm(x, lnfw_ref[...], lnfb_ref[...])                  # (BS, D)
    # TODO(synk): word_emb stays (B*S, 32) (masked 32-lane stores); lane-dense
    # repacking only pays off once the output is tens of KB.
    word_ref[...] = y.astype(word_ref.dtype)

    # ---- EOT pooling from the in-register y (one-hot MXU gather) + projection ----
    pool_oh = (lax.broadcasted_iota(jnp.int32, (B, BS), 1)
               == eot_ref[...]).astype(jnp.float32)                  # (B, BS)
    pooled = jnp.dot(pool_oh, y, preferred_element_type=jnp.float32) # (B, D)
    tx_ref[...] = jnp.dot(pooled, proj_ref[...],
                          preferred_element_type=jnp.float32).astype(tx_ref.dtype)


# ---------------------------------------------------------------------------
# Wrapper: one pallas_call for the whole forward
# ---------------------------------------------------------------------------
def _full_spec(a):
    nd = a.ndim
    return pl.BlockSpec(a.shape, lambda i, _nd=nd: (0,) * _nd)


def text_clip_forward(text, fast_params):
    (tok_emb, pos_bt, hm, attn_mask, ln1w, ln1b, wq, bq, wk, bk, wv, bv, wo, bo,
     ln2w, ln2b, wfc, bfc, wpr, bpr, lnf_w, lnf_b, proj) = fast_params

    text_flat = text.reshape(BS, 1).astype(jnp.int32)
    # CLIP EOT pooling index (argmax of token ids), turned into a flat row index.
    eot_idx = (jnp.argmax(text, axis=-1).astype(jnp.int32)
               + jnp.arange(B, dtype=jnp.int32) * S).reshape(B, 1)

    inputs = (text_flat, eot_idx, tok_emb, pos_bt, hm, attn_mask,
              ln1w, ln1b, wq, bq, wk, bk, wv, bv, wo, bo,
              ln2w, ln2b, wfc, bfc, wpr, bpr, lnf_w, lnf_b, proj)

    word_flat, enctxt = pl.pallas_call(
        fused_kernel,
        out_shape=(jax.ShapeDtypeStruct((BS, D), jnp.float32),
                   jax.ShapeDtypeStruct((B, E), jnp.float32)),
        grid=(1,),     # whole working set (~100 KB) stays resident in VMEM
        in_specs=[_full_spec(a) for a in inputs],
        out_specs=(pl.BlockSpec((BS, D), lambda i: (0, 0)),
                   pl.BlockSpec((B, E), lambda i: (0, 0))),
        compiler_params=pltpu.CompilerParams(dimension_semantics=("arbitrary",)),
    )(*inputs)

    return enctxt, word_flat.reshape(B, S, D)


# ---------------------------------------------------------------------------
# One-time host-side parameter transform (free: not part of the jitted forward)
# ---------------------------------------------------------------------------
def prepare_params(params):
    tok_emb, pos_emb, blocks, lnf_w, lnf_b, proj = params
    scale = 1.0 / float(np.sqrt(HD))
    stack = lambda i: jnp.stack([blk[i] for blk in blocks], axis=0)

    ln1w, ln1b = stack(0), stack(1)                    # (L, 1, D)
    wqkv, bqkv = stack(2), stack(3)                    # (L, D, 3D), (L, 1, 3D)
    wq = wqkv[:, :, 0 * D:1 * D] * scale               # fold 1/sqrt(HD) into Q
    wk = wqkv[:, :, 1 * D:2 * D]
    wv = wqkv[:, :, 2 * D:3 * D]
    bq = bqkv[:, :, 0 * D:1 * D] * scale
    bk = bqkv[:, :, 1 * D:2 * D]
    bv = bqkv[:, :, 2 * D:3 * D]
    wo, bo = stack(4), stack(5)                        # (L, D, D), (L, 1, D)
    ln2w, ln2b = stack(6), stack(7)
    wfc, bfc = stack(8), stack(9)
    wpr, bpr = stack(10), stack(11)

    pos_bt = jnp.tile(pos_emb, (B, 1))                 # (B*S, D), pre-tiled

    hm = np.zeros((H, 1, D), np.float32)               # per-head 0/1 column masks
    for h in range(H):
        hm[h, 0, h * HD:(h + 1) * HD] = 1.0
    hm = jnp.asarray(hm)

    # block-diagonal (batch-separating) causal mask over the flattened B*S rows
    mask = np.full((BS, BS), -np.inf, np.float32)
    for b in range(B):
        for i in range(S):
            mask[b * S + i, b * S:b * S + i + 1] = 0.0
    attn_mask = jnp.asarray(mask)

    return (tok_emb, pos_bt, hm, attn_mask, ln1w, ln1b, wq, bq, wk, bk, wv, bv,
            wo, bo, ln2w, ln2b, wfc, bfc, wpr, bpr, lnf_w, lnf_b, proj)


# ---------------------------------------------------------------------------
# Deterministic synthetic parameters
# ---------------------------------------------------------------------------
def init_params(key):
    ks = list(jax.random.split(key, 8 + 12 * L))
    nxt = iter(ks)

    def rnd(shape, scale=0.02):
        return (scale * jax.random.normal(next(nxt), shape)).astype(jnp.float32)

    tok_emb = rnd((V, D))
    pos_emb = rnd((S, D))
    blocks = []
    for _ in range(L):
        ln1w = 1.0 + rnd((1, D), 0.1)
        ln1b = rnd((1, D), 0.1)
        wqkv_t = rnd((D, 3 * D))      # = in_proj_weight.T
        bqkv = rnd((1, 3 * D))
        wo_t = rnd((D, D))            # = out_proj.weight.T
        bo = rnd((1, D))
        ln2w = 1.0 + rnd((1, D), 0.1)
        ln2b = rnd((1, D), 0.1)
        wfc_t = rnd((D, FF))          # = c_fc.weight.T
        bfc = rnd((1, FF))
        wpr_t = rnd((FF, D))          # = c_proj.weight.T
        bpr = rnd((1, D))
        blocks.append((ln1w, ln1b, wqkv_t, bqkv, wo_t, bo,
                       ln2w, ln2b, wfc_t, bfc, wpr_t, bpr))
    lnf_w = 1.0 + rnd((1, D), 0.1)
    lnf_b = rnd((1, D), 0.1)
    proj = rnd((D, E))
    return tok_emb, pos_emb, blocks, lnf_w, lnf_b, proj


# ---------------------------------------------------------------------------
# Pure-JAX reference (correctness check)
# ---------------------------------------------------------------------------
def _ln_ref(x, w, b, eps=1e-5):
    mu = x.mean(-1, keepdims=True)
    var = ((x - mu) ** 2).mean(-1, keepdims=True)
    return (x - mu) / jnp.sqrt(var + eps) * w + b


def reference_forward(text, params):
    tok_emb, pos_emb, blocks, lnf_w, lnf_b, proj = params
    x = jnp.take(tok_emb, text, axis=0) + pos_emb[None]
    mask = jnp.where(jnp.arange(S)[None, :] <= jnp.arange(S)[:, None], 0.0, -jnp.inf)
    for (ln1w, ln1b, wqkv_t, bqkv, wo_t, bo,
         ln2w, ln2b, wfc_t, bfc, wpr_t, bpr) in blocks:
        h = _ln_ref(x, ln1w[0], ln1b[0])
        qkv = h @ wqkv_t + bqkv[0]
        q, k, v = jnp.split(qkv, 3, axis=-1)
        q = q.reshape(B, S, H, HD).transpose(0, 2, 1, 3)
        k = k.reshape(B, S, H, HD).transpose(0, 2, 1, 3)
        v = v.reshape(B, S, H, HD).transpose(0, 2, 1, 3)
        s = jnp.einsum("bhqd,bhkd->bhqk", q, k) / jnp.sqrt(HD) + mask
        p = jax.nn.softmax(s, axis=-1)
        o = jnp.einsum("bhqk,bhkd->bhqd", p, v).transpose(0, 2, 1, 3).reshape(B, S, D)
        x = x + o @ wo_t + bo[0]
        h2 = _ln_ref(x, ln2w[0], ln2b[0])
        g = h2 @ wfc_t + bfc[0]
        g = g * jax.nn.sigmoid(1.702 * g)
        x = x + g @ wpr_t + bpr[0]
    word = _ln_ref(x, lnf_w[0], lnf_b[0])
    eot = jnp.argmax(text, axis=-1)
    enctxt = word[jnp.arange(B), eot] @ proj
    return enctxt, word


# ---------------------------------------------------------------------------
if __name__ == "__main__":
    key = jax.random.PRNGKey(0)
    k_tok, k_par = jax.random.split(key)
    text = jax.random.randint(k_tok, (B, S), 0, V, dtype=jnp.int32)
    params = init_params(k_par)
    fast_params = prepare_params(params)     # one-time host-side weight transform

    fwd = jax.jit(text_clip_forward)
    enctxt, word_emb = fwd(text, fast_params)
    jax.block_until_ready((enctxt, word_emb))

    enctxt_ref, word_emb_ref = reference_forward(text, params)
    np.testing.assert_allclose(np.asarray(word_emb), np.asarray(word_emb_ref),
                               rtol=1e-4, atol=1e-4)
    np.testing.assert_allclose(np.asarray(enctxt), np.asarray(enctxt_ref),
                               rtol=1e-4, atol=1e-4)

    print("KERNEL_OK")
</pallas_src>

<mosaic_0001>
module attributes {stable_mosaic.version = 11 : i64} {
  func.func @fused_kernel(%arg0: i32, %arg1: memref<16x1xi32, #tpu.memory_space<vmem>>, %arg2: memref<2x1xi32, #tpu.memory_space<vmem>>, %arg3: memref<64x32xf32, #tpu.memory_space<vmem>>, %arg4: memref<16x32xf32, #tpu.memory_space<vmem>>, %arg5: memref<4x1x32xf32, #tpu.memory_space<vmem>>, %arg6: memref<16x16xf32, #tpu.memory_space<vmem>>, %arg7: memref<2x1x32xf32, #tpu.memory_space<vmem>>, %arg8: memref<2x1x32xf32, #tpu.memory_space<vmem>>, %arg9: memref<2x32x32xf32, #tpu.memory_space<vmem>>, %arg10: memref<2x1x32xf32, #tpu.memory_space<vmem>>, %arg11: memref<2x32x32xf32, #tpu.memory_space<vmem>>, %arg12: memref<2x1x32xf32, #tpu.memory_space<vmem>>, %arg13: memref<2x32x32xf32, #tpu.memory_space<vmem>>, %arg14: memref<2x1x32xf32, #tpu.memory_space<vmem>>, %arg15: memref<2x32x32xf32, #tpu.memory_space<vmem>>, %arg16: memref<2x1x32xf32, #tpu.memory_space<vmem>>, %arg17: memref<2x1x32xf32, #tpu.memory_space<vmem>>, %arg18: memref<2x1x32xf32, #tpu.memory_space<vmem>>, %arg19: memref<2x32x128xf32, #tpu.memory_space<vmem>>, %arg20: memref<2x1x128xf32, #tpu.memory_space<vmem>>, %arg21: memref<2x128x32xf32, #tpu.memory_space<vmem>>, %arg22: memref<2x1x32xf32, #tpu.memory_space<vmem>>, %arg23: memref<1x32xf32, #tpu.memory_space<vmem>>, %arg24: memref<1x32xf32, #tpu.memory_space<vmem>>, %arg25: memref<32x32xf32, #tpu.memory_space<vmem>>, %arg26: memref<16x32xf32, #tpu.memory_space<vmem>>, %arg27: memref<2x32xf32, #tpu.memory_space<vmem>>) attributes {dimension_semantics = [#tpu.dimension_semantics<arbitrary>], iteration_bounds = array<i64: 1>, scalar_prefetch = 0 : i64, scratch_operands = 0 : i64, tpu.core_type = #tpu.core_type<tc>, window_params = [{pipeline_mode = #tpu.pipeline_mode<synchronous>, transform_indices = @transform_0, window_bounds = array<i64: 16, 1>}, {pipeline_mode = #tpu.pipeline_mode<synchronous>, transform_indices = @transform_1, window_bounds = array<i64: 2, 1>}, {pipeline_mode = #tpu.pipeline_mode<synchronous>, transform_indices = @transform_2, window_bounds = array<i64: 64, 32>}, {pipeline_mode = #tpu.pipeline_mode<synchronous>, transform_indices = @transform_3, window_bounds = array<i64: 16, 32>}, {pipeline_mode = #tpu.pipeline_mode<synchronous>, transform_indices = @transform_4, window_bounds = array<i64: 4, 1, 32>}, {pipeline_mode = #tpu.pipeline_mode<synchronous>, transform_indices = @transform_5, window_bounds = array<i64: 16, 16>}, {pipeline_mode = #tpu.pipeline_mode<synchronous>, transform_indices = @transform_6, window_bounds = array<i64: 2, 1, 32>}, {pipeline_mode = #tpu.pipeline_mode<synchronous>, transform_indices = @transform_7, window_bounds = array<i64: 2, 1, 32>}, {pipeline_mode = #tpu.pipeline_mode<synchronous>, transform_indices = @transform_8, window_bounds = array<i64: 2, 32, 32>}, {pipeline_mode = #tpu.pipeline_mode<synchronous>, transform_indices = @transform_9, window_bounds = array<i64: 2, 1, 32>}, {pipeline_mode = #tpu.pipeline_mode<synchronous>, transform_indices = @transform_10, window_bounds = array<i64: 2, 32, 32>}, {pipeline_mode = #tpu.pipeline_mode<synchronous>, transform_indices = @transform_11, window_bounds = array<i64: 2, 1, 32>}, {pipeline_mode = #tpu.pipeline_mode<synchronous>, transform_indices = @transform_12, window_bounds = array<i64: 2, 32, 32>}, {pipeline_mode = #tpu.pipeline_mode<synchronous>, transform_indices = @transform_13, window_bounds = array<i64: 2, 1, 32>}, {pipeline_mode = #tpu.pipeline_mode<synchronous>, transform_indices = @transform_14, window_bounds = array<i64: 2, 32, 32>}, {pipeline_mode = #tpu.pipeline_mode<synchronous>, transform_indices = @transform_15, window_bounds = array<i64: 2, 1, 32>}, {pipeline_mode = #tpu.pipeline_mode<synchronous>, transform_indices = @transform_16, window_bounds = array<i64: 2, 1, 32>}, {pipeline_mode = #tpu.pipeline_mode<synchronous>, transform_indices = @transform_17, window_bounds = array<i64: 2, 1, 32>}, {pipeline_mode = #tpu.pipeline_mode<synchronous>, transform_indices = @transform_18, window_bounds = array<i64: 2, 32, 128>}, {pipeline_mode = #tpu.pipeline_mode<synchronous>, transform_indices = @transform_19, window_bounds = array<i64: 2, 1, 128>}, {pipeline_mode = #tpu.pipeline_mode<synchronous>, transform_indices = @transform_20, window_bounds = array<i64: 2, 128, 32>}, {pipeline_mode = #tpu.pipeline_mode<synchronous>, transform_indices = @transform_21, window_bounds = array<i64: 2, 1, 32>}, {pipeline_mode = #tpu.pipeline_mode<synchronous>, transform_indices = @transform_22, window_bounds = array<i64: 1, 32>}, {pipeline_mode = #tpu.pipeline_mode<synchronous>, transform_indices = @transform_23, window_bounds = array<i64: 1, 32>}, {pipeline_mode = #tpu.pipeline_mode<synchronous>, transform_indices = @transform_24, window_bounds = array<i64: 32, 32>}, {pipeline_mode = #tpu.pipeline_mode<synchronous>, transform_indices = @transform_25, window_bounds = array<i64: 16, 32>}, {pipeline_mode = #tpu.pipeline_mode<synchronous>, transform_indices = @transform_26, window_bounds = array<i64: 2, 32>}]} {
    %c0 = arith.constant 0 : index
    %c0_0 = arith.constant 0 : index
    %0 = vector.load %arg1[%c0, %c0_0] : memref<16x1xi32, #tpu.memory_space<vmem>>, vector<16x1xi32>
    %1 = tpu.iota {dimensions = array<i32: 1>} : vector<16x64xi32>
    %2 = vector.broadcast %0 : vector<16x1xi32> to vector<16x64xi32>
    %3 = arith.cmpi eq, %1, %2 : vector<16x64xi32>
    %4 = arith.extui %3 : vector<16x64xi1> to vector<16x64xi32>
    %5 = arith.sitofp %4 : vector<16x64xi32> to vector<16x64xf32>
    %c0_1 = arith.constant 0 : index
    %c0_2 = arith.constant 0 : index
    %6 = vector.load %arg3[%c0_1, %c0_2] : memref<64x32xf32, #tpu.memory_space<vmem>>, vector<64x32xf32>
    %cst = arith.constant dense<0.000000e+00> : vector<16x32xf32>
    %7 = tpu.matmul %5, %6, %cst {dimension_numbers = #tpu.dot_dimension_numbers<[1], [0], [0], [1], [0, 0, 1, 1], [], []>} : vector<16x64xf32>, vector<64x32xf32>, vector<16x32xf32> -> vector<16x32xf32>
    %c0_3 = arith.constant 0 : index
    %c0_4 = arith.constant 0 : index
    %8 = vector.load %arg4[%c0_3, %c0_4] : memref<16x32xf32, #tpu.memory_space<vmem>>, vector<16x32xf32>
    %9 = arith.addf %7, %8 : vector<16x32xf32>
    %c0_5 = arith.constant 0 : index
    %c0_6 = arith.constant 0 : index
    %10 = vector.load %arg6[%c0_5, %c0_6] : memref<16x16xf32, #tpu.memory_space<vmem>>, vector<16x16xf32>
    %c0_7 = arith.constant 0 : index
    %c0_8 = arith.constant 0 : index
    %c0_9 = arith.constant 0 : index
    %11 = vector.load %arg5[%c0_7, %c0_8, %c0_9] : memref<4x1x32xf32, #tpu.memory_space<vmem>>, vector<1x1x32xf32>
    %12 = vector.shape_cast %11 : vector<1x1x32xf32> to vector<1x32xf32>
    %c1 = arith.constant 1 : index
    %c0_10 = arith.constant 0 : index
    %c0_11 = arith.constant 0 : index
    %13 = vector.load %arg5[%c1, %c0_10, %c0_11] : memref<4x1x32xf32, #tpu.memory_space<vmem>>, vector<1x1x32xf32>
    %14 = vector.shape_cast %13 : vector<1x1x32xf32> to vector<1x32xf32>
    %c2 = arith.constant 2 : index
    %c0_12 = arith.constant 0 : index
    %c0_13 = arith.constant 0 : index
    %15 = vector.load %arg5[%c2, %c0_12, %c0_13] : memref<4x1x32xf32, #tpu.memory_space<vmem>>, vector<1x1x32xf32>
    %16 = vector.shape_cast %15 : vector<1x1x32xf32> to vector<1x32xf32>
    %c3 = arith.constant 3 : index
    %c0_14 = arith.constant 0 : index
    %c0_15 = arith.constant 0 : index
    %17 = vector.load %arg5[%c3, %c0_14, %c0_15] : memref<4x1x32xf32, #tpu.memory_space<vmem>>, vector<1x1x32xf32>
    %18 = vector.shape_cast %17 : vector<1x1x32xf32> to vector<1x32xf32>
    %c0_16 = arith.constant 0 : index
    %c0_17 = arith.constant 0 : index
    %c0_18 = arith.constant 0 : index
    %19 = vector.load %arg7[%c0_16, %c0_17, %c0_18] : memref<2x1x32xf32, #tpu.memory_space<vmem>>, vector<1x1x32xf32>
    %20 = vector.shape_cast %19 : vector<1x1x32xf32> to vector<1x32xf32>
    %c0_19 = arith.constant 0 : index
    %c0_20 = arith.constant 0 : index
    %c0_21 = arith.constant 0 : index
    %21 = vector.load %arg8[%c0_19, %c0_20, %c0_21] : memref<2x1x32xf32, #tpu.memory_space<vmem>>, vector<1x1x32xf32>
    %22 = vector.shape_cast %21 : vector<1x1x32xf32> to vector<1x32xf32>
    %cst_22 = arith.constant dense<0.000000e+00> : vector<16xf32>
    %23 = vector.multi_reduction <add>, %9, %cst_22 [1] : vector<16x32xf32> to vector<16xf32>
    %24 = vector.shape_cast %23 : vector<16xf32> to vector<16x1xf32>
    %cst_23 = arith.constant 3.200000e+01 : f32
    %25 = vector.broadcast %cst_23 : f32 to vector<16x1xf32>
    %26 = arith.divf %24, %25 : vector<16x1xf32>
    %27 = vector.broadcast %26 : vector<16x1xf32> to vector<16x32xf32>
    %28 = arith.subf %9, %27 : vector<16x32xf32>
    %29 = arith.mulf %28, %28 : vector<16x32xf32>
    %cst_24 = arith.constant dense<0.000000e+00> : vector<16xf32>
    %30 = vector.multi_reduction <add>, %29, %cst_24 [1] : vector<16x32xf32> to vector<16xf32>
    %31 = vector.shape_cast %30 : vector<16xf32> to vector<16x1xf32>
    %cst_25 = arith.constant 3.200000e+01 : f32
    %32 = vector.broadcast %cst_25 : f32 to vector<16x1xf32>
    %33 = arith.divf %31, %32 : vector<16x1xf32>
    %cst_26 = arith.constant 9.99999974E-6 : f32
    %34 = vector.broadcast %cst_26 : f32 to vector<16x1xf32>
    %35 = arith.addf %33, %34 : vector<16x1xf32>
    %36 = math.rsqrt %35 : vector<16x1xf32>
    %37 = vector.broadcast %36 : vector<16x1xf32> to vector<16x32xf32>
    %38 = arith.mulf %28, %37 : vector<16x32xf32>
    %39 = vector.broadcast %20 : vector<1x32xf32> to vector<16x32xf32>
    %40 = arith.mulf %38, %39 : vector<16x32xf32>
    %41 = vector.broadcast %22 : vector<1x32xf32> to vector<16x32xf32>
    %42 = arith.addf %40, %41 : vector<16x32xf32>
    %c0_27 = arith.constant 0 : index
    %c0_28 = arith.constant 0 : index
    %c0_29 = arith.constant 0 : index
    %43 = vector.load %arg9[%c0_27, %c0_28, %c0_29] : memref<2x32x32xf32, #tpu.memory_space<vmem>>, vector<1x32x32xf32>
    %44 = vector.shape_cast %43 : vector<1x32x32xf32> to vector<32x32xf32>
    %cst_30 = arith.constant dense<0.000000e+00> : vector<16x32xf32>
    %45 = tpu.matmul %42, %44, %cst_30 {dimension_numbers = #tpu.dot_dimension_numbers<[1], [0], [0], [1], [0, 0, 1, 1], [], []>} : vector<16x32xf32>, vector<32x32xf32>, vector<16x32xf32> -> vector<16x32xf32>
    %c0_31 = arith.constant 0 : index
    %c0_32 = arith.constant 0 : index
    %c0_33 = arith.constant 0 : index
    %46 = vector.load %arg10[%c0_31, %c0_32, %c0_33] : memref<2x1x32xf32, #tpu.memory_space<vmem>>, vector<1x1x32xf32>
    %47 = vector.shape_cast %46 : vector<1x1x32xf32> to vector<1x32xf32>
    %48 = vector.broadcast %47 : vector<1x32xf32> to vector<16x32xf32>
    %49 = arith.addf %45, %48 : vector<16x32xf32>
    %c0_34 = arith.constant 0 : index
    %c0_35 = arith.constant 0 : index
    %c0_36 = arith.constant 0 : index
    %50 = vector.load %arg11[%c0_34, %c0_35, %c0_36] : memref<2x32x32xf32, #tpu.memory_space<vmem>>, vector<1x32x32xf32>
    %51 = vector.shape_cast %50 : vector<1x32x32xf32> to vector<32x32xf32>
    %cst_37 = arith.constant dense<0.000000e+00> : vector<16x32xf32>
    %52 = tpu.matmul %42, %51, %cst_37 {dimension_numbers = #tpu.dot_dimension_numbers<[1], [0], [0], [1], [0, 0, 1, 1], [], []>} : vector<16x32xf32>, vector<32x32xf32>, vector<16x32xf32> -> vector<16x32xf32>
    %c0_38 = arith.constant 0 : index
    %c0_39 = arith.constant 0 : index
    %c0_40 = arith.constant 0 : index
    %53 = vector.load %arg12[%c0_38, %c0_39, %c0_40] : memref<2x1x32xf32, #tpu.memory_space<vmem>>, vector<1x1x32xf32>
    %54 = vector.shape_cast %53 : vector<1x1x32xf32> to vector<1x32xf32>
    %55 = vector.broadcast %54 : vector<1x32xf32> to vector<16x32xf32>
    %56 = arith.addf %52, %55 : vector<16x32xf32>
    %c0_41 = arith.constant 0 : index
    %c0_42 = arith.constant 0 : index
    %c0_43 = arith.constant 0 : index
    %57 = vector.load %arg13[%c0_41, %c0_42, %c0_43] : memref<2x32x32xf32, #tpu.memory_space<vmem>>, vector<1x32x32xf32>
    %58 = vector.shape_cast %57 : vector<1x32x32xf32> to vector<32x32xf32>
    %cst_44 = arith.constant dense<0.000000e+00> : vector<16x32xf32>
    %59 = tpu.matmul %42, %58, %cst_44 {dimension_numbers = #tpu.dot_dimension_numbers<[1], [0], [0], [1], [0, 0, 1, 1], [], []>} : vector<16x32xf32>, vector<32x32xf32>, vector<16x32xf32> -> vector<16x32xf32>
    %c0_45 = arith.constant 0 : index
    %c0_46 = arith.constant 0 : index
    %c0_47 = arith.constant 0 : index
    %60 = vector.load %arg14[%c0_45, %c0_46, %c0_47] : memref<2x1x32xf32, #tpu.memory_space<vmem>>, vector<1x1x32xf32>
    %61 = vector.shape_cast %60 : vector<1x1x32xf32> to vector<1x32xf32>
    %62 = vector.broadcast %61 : vector<1x32xf32> to vector<16x32xf32>
    %63 = arith.addf %59, %62 : vector<16x32xf32>
    %64 = vector.broadcast %12 : vector<1x32xf32> to vector<16x32xf32>
    %65 = arith.mulf %49, %64 : vector<16x32xf32>
    %cst_48 = arith.constant dense<0.000000e+00> : vector<16x16xf32>
    %66 = tpu.matmul %65, %56, %cst_48 {dimension_numbers = #tpu.dot_dimension_numbers<[1], [1], [0], [0], [0, 0, 1, 0], [], []>} : vector<16x32xf32>, vector<16x32xf32>, vector<16x16xf32> -> vector<16x16xf32>
    %67 = arith.addf %66, %10 : vector<16x16xf32>
    %cst_49 = arith.constant dense<0xFF800000> : vector<16xf32>
    %68 = vector.multi_reduction <maximumf>, %67, %cst_49 [1] : vector<16x16xf32> to vector<16xf32>
    %69 = vector.shape_cast %68 : vector<16xf32> to vector<16x1xf32>
    %70 = vector.broadcast %69 : vector<16x1xf32> to vector<16x16xf32>
    %71 = arith.subf %67, %70 : vector<16x16xf32>
    %72 = math.exp %71 : vector<16x16xf32>
    %cst_50 = arith.constant dense<0.000000e+00> : vector<16xf32>
    %73 = vector.multi_reduction <add>, %72, %cst_50 [1] : vector<16x16xf32> to vector<16xf32>
    %74 = vector.shape_cast %73 : vector<16xf32> to vector<16x1xf32>
    %75 = tpu.reciprocal %74 : vector<16x1xf32> -> vector<16x1xf32>
    %76 = vector.broadcast %75 : vector<16x1xf32> to vector<16x16xf32>
    %77 = arith.mulf %72, %76 : vector<16x16xf32>
    %78 = vector.broadcast %12 : vector<1x32xf32> to vector<16x32xf32>
    %79 = arith.mulf %63, %78 : vector<16x32xf32>
    %cst_51 = arith.constant dense<0.000000e+00> : vector<16x32xf32>
    %80 = tpu.matmul %77, %79, %cst_51 {dimension_numbers = #tpu.dot_dimension_numbers<[1], [0], [0], [1], [0, 0, 1, 1], [], []>} : vector<16x16xf32>, vector<16x32xf32>, vector<16x32xf32> -> vector<16x32xf32>
    %81 = vector.broadcast %14 : vector<1x32xf32> to vector<16x32xf32>
    %82 = arith.mulf %49, %81 : vector<16x32xf32>
    %cst_52 = arith.constant dense<0.000000e+00> : vector<16x16xf32>
    %83 = tpu.matmul %82, %56, %cst_52 {dimension_numbers = #tpu.dot_dimension_numbers<[1], [1], [0], [0], [0, 0, 1, 0], [], []>} : vector<16x32xf32>, vector<16x32xf32>, vector<16x16xf32> -> vector<16x16xf32>
    %84 = arith.addf %83, %10 : vector<16x16xf32>
    %cst_53 = arith.constant dense<0xFF800000> : vector<16xf32>
    %85 = vector.multi_reduction <maximumf>, %84, %cst_53 [1] : vector<16x16xf32> to vector<16xf32>
    %86 = vector.shape_cast %85 : vector<16xf32> to vector<16x1xf32>
    %87 = vector.broadcast %86 : vector<16x1xf32> to vector<16x16xf32>
    %88 = arith.subf %84, %87 : vector<16x16xf32>
    %89 = math.exp %88 : vector<16x16xf32>
    %cst_54 = arith.constant dense<0.000000e+00> : vector<16xf32>
    %90 = vector.multi_reduction <add>, %89, %cst_54 [1] : vector<16x16xf32> to vector<16xf32>
    %91 = vector.shape_cast %90 : vector<16xf32> to vector<16x1xf32>
    %92 = tpu.reciprocal %91 : vector<16x1xf32> -> vector<16x1xf32>
    %93 = vector.broadcast %92 : vector<16x1xf32> to vector<16x16xf32>
    %94 = arith.mulf %89, %93 : vector<16x16xf32>
    %95 = vector.broadcast %14 : vector<1x32xf32> to vector<16x32xf32>
    %96 = arith.mulf %63, %95 : vector<16x32xf32>
    %cst_55 = arith.constant dense<0.000000e+00> : vector<16x32xf32>
    %97 = tpu.matmul %94, %96, %cst_55 {dimension_numbers = #tpu.dot_dimension_numbers<[1], [0], [0], [1], [0, 0, 1, 1], [], []>} : vector<16x16xf32>, vector<16x32xf32>, vector<16x32xf32> -> vector<16x32xf32>
    %98 = arith.addf %80, %97 : vector<16x32xf32>
    %99 = vector.broadcast %16 : vector<1x32xf32> to vector<16x32xf32>
    %100 = arith.mulf %49, %99 : vector<16x32xf32>
    %cst_56 = arith.constant dense<0.000000e+00> : vector<16x16xf32>
    %101 = tpu.matmul %100, %56, %cst_56 {dimension_numbers = #tpu.dot_dimension_numbers<[1], [1], [0], [0], [0, 0, 1, 0], [], []>} : vector<16x32xf32>, vector<16x32xf32>, vector<16x16xf32> -> vector<16x16xf32>
    %102 = arith.addf %101, %10 : vector<16x16xf32>
    %cst_57 = arith.constant dense<0xFF800000> : vector<16xf32>
    %103 = vector.multi_reduction <maximumf>, %102, %cst_57 [1] : vector<16x16xf32> to vector<16xf32>
    %104 = vector.shape_cast %103 : vector<16xf32> to vector<16x1xf32>
    %105 = vector.broadcast %104 : vector<16x1xf32> to vector<16x16xf32>
    %106 = arith.subf %102, %105 : vector<16x16xf32>
    %107 = math.exp %106 : vector<16x16xf32>
    %cst_58 = arith.constant dense<0.000000e+00> : vector<16xf32>
    %108 = vector.multi_reduction <add>, %107, %cst_58 [1] : vector<16x16xf32> to vector<16xf32>
    %109 = vector.shape_cast %108 : vector<16xf32> to vector<16x1xf32>
    %110 = tpu.reciprocal %109 : vector<16x1xf32> -> vector<16x1xf32>
    %111 = vector.broadcast %110 : vector<16x1xf32> to vector<16x16xf32>
    %112 = arith.mulf %107, %111 : vector<16x16xf32>
    %113 = vector.broadcast %16 : vector<1x32xf32> to vector<16x32xf32>
    %114 = arith.mulf %63, %113 : vector<16x32xf32>
    %cst_59 = arith.constant dense<0.000000e+00> : vector<16x32xf32>
    %115 = tpu.matmul %112, %114, %cst_59 {dimension_numbers = #tpu.dot_dimension_numbers<[1], [0], [0], [1], [0, 0, 1, 1], [], []>} : vector<16x16xf32>, vector<16x32xf32>, vector<16x32xf32> -> vector<16x32xf32>
    %116 = arith.addf %98, %115 : vector<16x32xf32>
    %117 = vector.broadcast %18 : vector<1x32xf32> to vector<16x32xf32>
    %118 = arith.mulf %49, %117 : vector<16x32xf32>
    %cst_60 = arith.constant dense<0.000000e+00> : vector<16x16xf32>
    %119 = tpu.matmul %118, %56, %cst_60 {dimension_numbers = #tpu.dot_dimension_numbers<[1], [1], [0], [0], [0, 0, 1, 0], [], []>} : vector<16x32xf32>, vector<16x32xf32>, vector<16x16xf32> -> vector<16x16xf32>
    %120 = arith.addf %119, %10 : vector<16x16xf32>
    %cst_61 = arith.constant dense<0xFF800000> : vector<16xf32>
    %121 = vector.multi_reduction <maximumf>, %120, %cst_61 [1] : vector<16x16xf32> to vector<16xf32>
    %122 = vector.shape_cast %121 : vector<16xf32> to vector<16x1xf32>
    %123 = vector.broadcast %122 : vector<16x1xf32> to vector<16x16xf32>
    %124 = arith.subf %120, %123 : vector<16x16xf32>
    %125 = math.exp %124 : vector<16x16xf32>
    %cst_62 = arith.constant dense<0.000000e+00> : vector<16xf32>
    %126 = vector.multi_reduction <add>, %125, %cst_62 [1] : vector<16x16xf32> to vector<16xf32>
    %127 = vector.shape_cast %126 : vector<16xf32> to vector<16x1xf32>
    %128 = tpu.reciprocal %127 : vector<16x1xf32> -> vector<16x1xf32>
    %129 = vector.broadcast %128 : vector<16x1xf32> to vector<16x16xf32>
    %130 = arith.mulf %125, %129 : vector<16x16xf32>
    %131 = vector.broadcast %18 : vector<1x32xf32> to vector<16x32xf32>
    %132 = arith.mulf %63, %131 : vector<16x32xf32>
    %cst_63 = arith.constant dense<0.000000e+00> : vector<16x32xf32>
    %133 = tpu.matmul %130, %132, %cst_63 {dimension_numbers = #tpu.dot_dimension_numbers<[1], [0], [0], [1], [0, 0, 1, 1], [], []>} : vector<16x16xf32>, vector<16x32xf32>, vector<16x32xf32> -> vector<16x32xf32>
    %134 = arith.addf %116, %133 : vector<16x32xf32>
    %c0_64 = arith.constant 0 : index
    %c0_65 = arith.constant 0 : index
    %c0_66 = arith.constant 0 : index
    %135 = vector.load %arg15[%c0_64, %c0_65, %c0_66] : memref<2x32x32xf32, #tpu.memory_space<vmem>>, vector<1x32x32xf32>
    %136 = vector.shape_cast %135 : vector<1x32x32xf32> to vector<32x32xf32>
    %cst_67 = arith.constant dense<0.000000e+00> : vector<16x32xf32>
    %137 = tpu.matmul %134, %136, %cst_67 {dimension_numbers = #tpu.dot_dimension_numbers<[1], [0], [0], [1], [0, 0, 1, 1], [], []>} : vector<16x32xf32>, vector<32x32xf32>, vector<16x32xf32> -> vector<16x32xf32>
    %138 = arith.addf %9, %137 : vector<16x32xf32>
    %c0_68 = arith.constant 0 : index
    %c0_69 = arith.constant 0 : index
    %c0_70 = arith.constant 0 : index
    %139 = vector.load %arg16[%c0_68, %c0_69, %c0_70] : memref<2x1x32xf32, #tpu.memory_space<vmem>>, vector<1x1x32xf32>
    %140 = vector.shape_cast %139 : vector<1x1x32xf32> to vector<1x32xf32>
    %141 = vector.broadcast %140 : vector<1x32xf32> to vector<16x32xf32>
    %142 = arith.addf %138, %141 : vector<16x32xf32>
    %c0_71 = arith.constant 0 : index
    %c0_72 = arith.constant 0 : index
    %c0_73 = arith.constant 0 : index
    %143 = vector.load %arg17[%c0_71, %c0_72, %c0_73] : memref<2x1x32xf32, #tpu.memory_space<vmem>>, vector<1x1x32xf32>
    %144 = vector.shape_cast %143 : vector<1x1x32xf32> to vector<1x32xf32>
    %c0_74 = arith.constant 0 : index
    %c0_75 = arith.constant 0 : index
    %c0_76 = arith.constant 0 : index
    %145 = vector.load %arg18[%c0_74, %c0_75, %c0_76] : memref<2x1x32xf32, #tpu.memory_space<vmem>>, vector<1x1x32xf32>
    %146 = vector.shape_cast %145 : vector<1x1x32xf32> to vector<1x32xf32>
    %cst_77 = arith.constant dense<0.000000e+00> : vector<16xf32>
    %147 = vector.multi_reduction <add>, %142, %cst_77 [1] : vector<16x32xf32> to vector<16xf32>
    %148 = vector.shape_cast %147 : vector<16xf32> to vector<16x1xf32>
    %cst_78 = arith.constant 3.200000e+01 : f32
    %149 = vector.broadcast %cst_78 : f32 to vector<16x1xf32>
    %150 = arith.divf %148, %149 : vector<16x1xf32>
    %151 = vector.broadcast %150 : vector<16x1xf32> to vector<16x32xf32>
    %152 = arith.subf %142, %151 : vector<16x32xf32>
    %153 = arith.mulf %152, %152 : vector<16x32xf32>
    %cst_79 = arith.constant dense<0.000000e+00> : vector<16xf32>
    %154 = vector.multi_reduction <add>, %153, %cst_79 [1] : vector<16x32xf32> to vector<16xf32>
    %155 = vector.shape_cast %154 : vector<16xf32> to vector<16x1xf32>
    %cst_80 = arith.constant 3.200000e+01 : f32
    %156 = vector.broadcast %cst_80 : f32 to vector<16x1xf32>
    %157 = arith.divf %155, %156 : vector<16x1xf32>
    %cst_81 = arith.constant 9.99999974E-6 : f32
    %158 = vector.broadcast %cst_81 : f32 to vector<16x1xf32>
    %159 = arith.addf %157, %158 : vector<16x1xf32>
    %160 = math.rsqrt %159 : vector<16x1xf32>
    %161 = vector.broadcast %160 : vector<16x1xf32> to vector<16x32xf32>
    %162 = arith.mulf %152, %161 : vector<16x32xf32>
    %163 = vector.broadcast %144 : vector<1x32xf32> to vector<16x32xf32>
    %164 = arith.mulf %162, %163 : vector<16x32xf32>
    %165 = vector.broadcast %146 : vector<1x32xf32> to vector<16x32xf32>
    %166 = arith.addf %164, %165 : vector<16x32xf32>
    %c0_82 = arith.constant 0 : index
    %c0_83 = arith.constant 0 : index
    %c0_84 = arith.constant 0 : index
    %167 = vector.load %arg19[%c0_82, %c0_83, %c0_84] : memref<2x32x128xf32, #tpu.memory_space<vmem>>, vector<1x32x128xf32>
    %168 = vector.shape_cast %167 : vector<1x32x128xf32> to vector<32x128xf32>
    %cst_85 = arith.constant dense<0.000000e+00> : vector<16x128xf32>
    %169 = tpu.matmul %166, %168, %cst_85 {dimension_numbers = #tpu.dot_dimension_numbers<[1], [0], [0], [1], [0, 0, 1, 1], [], []>} : vector<16x32xf32>, vector<32x128xf32>, vector<16x128xf32> -> vector<16x128xf32>
    %c0_86 = arith.constant 0 : index
    %c0_87 = arith.constant 0 : index
    %c0_88 = arith.constant 0 : index
    %170 = vector.load %arg20[%c0_86, %c0_87, %c0_88] : memref<2x1x128xf32, #tpu.memory_space<vmem>>, vector<1x1x128xf32>
    %171 = vector.shape_cast %170 : vector<1x1x128xf32> to vector<1x128xf32>
    %172 = vector.broadcast %171 : vector<1x128xf32> to vector<16x128xf32>
    %173 = arith.addf %169, %172 : vector<16x128xf32>
    %cst_89 = arith.constant 1.702000e+00 : f32
    %174 = vector.broadcast %cst_89 : f32 to vector<16x128xf32>
    %175 = arith.mulf %174, %173 : vector<16x128xf32>
    %176 = arith.negf %175 : vector<16x128xf32>
    %177 = math.exp %176 : vector<16x128xf32>
    %cst_90 = arith.constant 1.000000e+00 : f32
    %178 = vector.broadcast %cst_90 : f32 to vector<16x128xf32>
    %179 = arith.addf %178, %177 : vector<16x128xf32>
    %180 = arith.divf %178, %179 : vector<16x128xf32>
    %181 = arith.mulf %173, %180 : vector<16x128xf32>
    %c0_91 = arith.constant 0 : index
    %c0_92 = arith.constant 0 : index
    %c0_93 = arith.constant 0 : index
    %182 = vector.load %arg21[%c0_91, %c0_92, %c0_93] : memref<2x128x32xf32, #tpu.memory_space<vmem>>, vector<1x128x32xf32>
    %183 = vector.shape_cast %182 : vector<1x128x32xf32> to vector<128x32xf32>
    %cst_94 = arith.constant dense<0.000000e+00> : vector<16x32xf32>
    %184 = tpu.matmul %181, %183, %cst_94 {dimension_numbers = #tpu.dot_dimension_numbers<[1], [0], [0], [1], [0, 0, 1, 1], [], []>} : vector<16x128xf32>, vector<128x32xf32>, vector<16x32xf32> -> vector<16x32xf32>
    %185 = arith.addf %142, %184 : vector<16x32xf32>
    %c0_95 = arith.constant 0 : index
    %c0_96 = arith.constant 0 : index
    %c0_97 = arith.constant 0 : index
    %186 = vector.load %arg22[%c0_95, %c0_96, %c0_97] : memref<2x1x32xf32, #tpu.memory_space<vmem>>, vector<1x1x32xf32>
    %187 = vector.shape_cast %186 : vector<1x1x32xf32> to vector<1x32xf32>
    %188 = vector.broadcast %187 : vector<1x32xf32> to vector<16x32xf32>
    %189 = arith.addf %185, %188 : vector<16x32xf32>
    %c1_98 = arith.constant 1 : index
    %c0_99 = arith.constant 0 : index
    %c0_100 = arith.constant 0 : index
    %190 = vector.load %arg7[%c1_98, %c0_99, %c0_100] : memref<2x1x32xf32, #tpu.memory_space<vmem>>, vector<1x1x32xf32>
    %191 = vector.shape_cast %190 : vector<1x1x32xf32> to vector<1x32xf32>
    %c1_101 = arith.constant 1 : index
    %c0_102 = arith.constant 0 : index
    %c0_103 = arith.constant 0 : index
    %192 = vector.load %arg8[%c1_101, %c0_102, %c0_103] : memref<2x1x32xf32, #tpu.memory_space<vmem>>, vector<1x1x32xf32>
    %193 = vector.shape_cast %192 : vector<1x1x32xf32> to vector<1x32xf32>
    %cst_104 = arith.constant dense<0.000000e+00> : vector<16xf32>
    %194 = vector.multi_reduction <add>, %189, %cst_104 [1] : vector<16x32xf32> to vector<16xf32>
    %195 = vector.shape_cast %194 : vector<16xf32> to vector<16x1xf32>
    %cst_105 = arith.constant 3.200000e+01 : f32
    %196 = vector.broadcast %cst_105 : f32 to vector<16x1xf32>
    %197 = arith.divf %195, %196 : vector<16x1xf32>
    %198 = vector.broadcast %197 : vector<16x1xf32> to vector<16x32xf32>
    %199 = arith.subf %189, %198 : vector<16x32xf32>
    %200 = arith.mulf %199, %199 : vector<16x32xf32>
    %cst_106 = arith.constant dense<0.000000e+00> : vector<16xf32>
    %201 = vector.multi_reduction <add>, %200, %cst_106 [1] : vector<16x32xf32> to vector<16xf32>
    %202 = vector.shape_cast %201 : vector<16xf32> to vector<16x1xf32>
    %cst_107 = arith.constant 3.200000e+01 : f32
    %203 = vector.broadcast %cst_107 : f32 to vector<16x1xf32>
    %204 = arith.divf %202, %203 : vector<16x1xf32>
    %cst_108 = arith.constant 9.99999974E-6 : f32
    %205 = vector.broadcast %cst_108 : f32 to vector<16x1xf32>
    %206 = arith.addf %204, %205 : vector<16x1xf32>
    %207 = math.rsqrt %206 : vector<16x1xf32>
    %208 = vector.broadcast %207 : vector<16x1xf32> to vector<16x32xf32>
    %209 = arith.mulf %199, %208 : vector<16x32xf32>
    %210 = vector.broadcast %191 : vector<1x32xf32> to vector<16x32xf32>
    %211 = arith.mulf %209, %210 : vector<16x32xf32>
    %212 = vector.broadcast %193 : vector<1x32xf32> to vector<16x32xf32>
    %213 = arith.addf %211, %212 : vector<16x32xf32>
    %c1_109 = arith.constant 1 : index
    %c0_110 = arith.constant 0 : index
    %c0_111 = arith.constant 0 : index
    %214 = vector.load %arg9[%c1_109, %c0_110, %c0_111] : memref<2x32x32xf32, #tpu.memory_space<vmem>>, vector<1x32x32xf32>
    %215 = vector.shape_cast %214 : vector<1x32x32xf32> to vector<32x32xf32>
    %cst_112 = arith.constant dense<0.000000e+00> : vector<16x32xf32>
    %216 = tpu.matmul %213, %215, %cst_112 {dimension_numbers = #tpu.dot_dimension_numbers<[1], [0], [0], [1], [0, 0, 1, 1], [], []>} : vector<16x32xf32>, vector<32x32xf32>, vector<16x32xf32> -> vector<16x32xf32>
    %c1_113 = arith.constant 1 : index
    %c0_114 = arith.constant 0 : index
    %c0_115 = arith.constant 0 : index
    %217 = vector.load %arg10[%c1_113, %c0_114, %c0_115] : memref<2x1x32xf32, #tpu.memory_space<vmem>>, vector<1x1x32xf32>
    %218 = vector.shape_cast %217 : vector<1x1x32xf32> to vector<1x32xf32>
    %219 = vector.broadcast %218 : vector<1x32xf32> to vector<16x32xf32>
    %220 = arith.addf %216, %219 : vector<16x32xf32>
    %c1_116 = arith.constant 1 : index
    %c0_117 = arith.constant 0 : index
    %c0_118 = arith.constant 0 : index
    %221 = vector.load %arg11[%c1_116, %c0_117, %c0_118] : memref<2x32x32xf32, #tpu.memory_space<vmem>>, vector<1x32x32xf32>
    %222 = vector.shape_cast %221 : vector<1x32x32xf32> to vector<32x32xf32>
    %cst_119 = arith.constant dense<0.000000e+00> : vector<16x32xf32>
    %223 = tpu.matmul %213, %222, %cst_119 {dimension_numbers = #tpu.dot_dimension_numbers<[1], [0], [0], [1], [0, 0, 1, 1], [], []>} : vector<16x32xf32>, vector<32x32xf32>, vector<16x32xf32> -> vector<16x32xf32>
    %c1_120 = arith.constant 1 : index
    %c0_121 = arith.constant 0 : index
    %c0_122 = arith.constant 0 : index
    %224 = vector.load %arg12[%c1_120, %c0_121, %c0_122] : memref<2x1x32xf32, #tpu.memory_space<vmem>>, vector<1x1x32xf32>
    %225 = vector.shape_cast %224 : vector<1x1x32xf32> to vector<1x32xf32>
    %226 = vector.broadcast %225 : vector<1x32xf32> to vector<16x32xf32>
    %227 = arith.addf %223, %226 : vector<16x32xf32>
    %c1_123 = arith.constant 1 : index
    %c0_124 = arith.constant 0 : index
    %c0_125 = arith.constant 0 : index
    %228 = vector.load %arg13[%c1_123, %c0_124, %c0_125] : memref<2x32x32xf32, #tpu.memory_space<vmem>>, vector<1x32x32xf32>
    %229 = vector.shape_cast %228 : vector<1x32x32xf32> to vector<32x32xf32>
    %cst_126 = arith.constant dense<0.000000e+00> : vector<16x32xf32>
    %230 = tpu.matmul %213, %229, %cst_126 {dimension_numbers = #tpu.dot_dimension_numbers<[1], [0], [0], [1], [0, 0, 1, 1], [], []>} : vector<16x32xf32>, vector<32x32xf32>, vector<16x32xf32> -> vector<16x32xf32>
    %c1_127 = arith.constant 1 : index
    %c0_128 = arith.constant 0 : index
    %c0_129 = arith.constant 0 : index
    %231 = vector.load %arg14[%c1_127, %c0_128, %c0_129] : memref<2x1x32xf32, #tpu.memory_space<vmem>>, vector<1x1x32xf32>
    %232 = vector.shape_cast %231 : vector<1x1x32xf32> to vector<1x32xf32>
    %233 = vector.broadcast %232 : vector<1x32xf32> to vector<16x32xf32>
    %234 = arith.addf %230, %233 : vector<16x32xf32>
    %235 = vector.broadcast %12 : vector<1x32xf32> to vector<16x32xf32>
    %236 = arith.mulf %220, %235 : vector<16x32xf32>
    %cst_130 = arith.constant dense<0.000000e+00> : vector<16x16xf32>
    %237 = tpu.matmul %236, %227, %cst_130 {dimension_numbers = #tpu.dot_dimension_numbers<[1], [1], [0], [0], [0, 0, 1, 0], [], []>} : vector<16x32xf32>, vector<16x32xf32>, vector<16x16xf32> -> vector<16x16xf32>
    %238 = arith.addf %237, %10 : vector<16x16xf32>
    %cst_131 = arith.constant dense<0xFF800000> : vector<16xf32>
    %239 = vector.multi_reduction <maximumf>, %238, %cst_131 [1] : vector<16x16xf32> to vector<16xf32>
    %240 = vector.shape_cast %239 : vector<16xf32> to vector<16x1xf32>
    %241 = vector.broadcast %240 : vector<16x1xf32> to vector<16x16xf32>
    %242 = arith.subf %238, %241 : vector<16x16xf32>
    %243 = math.exp %242 : vector<16x16xf32>
    %cst_132 = arith.constant dense<0.000000e+00> : vector<16xf32>
    %244 = vector.multi_reduction <add>, %243, %cst_132 [1] : vector<16x16xf32> to vector<16xf32>
    %245 = vector.shape_cast %244 : vector<16xf32> to vector<16x1xf32>
    %246 = tpu.reciprocal %245 : vector<16x1xf32> -> vector<16x1xf32>
    %247 = vector.broadcast %246 : vector<16x1xf32> to vector<16x16xf32>
    %248 = arith.mulf %243, %247 : vector<16x16xf32>
    %249 = vector.broadcast %12 : vector<1x32xf32> to vector<16x32xf32>
    %250 = arith.mulf %234, %249 : vector<16x32xf32>
    %cst_133 = arith.constant dense<0.000000e+00> : vector<16x32xf32>
    %251 = tpu.matmul %248, %250, %cst_133 {dimension_numbers = #tpu.dot_dimension_numbers<[1], [0], [0], [1], [0, 0, 1, 1], [], []>} : vector<16x16xf32>, vector<16x32xf32>, vector<16x32xf32> -> vector<16x32xf32>
    %252 = vector.broadcast %14 : vector<1x32xf32> to vector<16x32xf32>
    %253 = arith.mulf %220, %252 : vector<16x32xf32>
    %cst_134 = arith.constant dense<0.000000e+00> : vector<16x16xf32>
    %254 = tpu.matmul %253, %227, %cst_134 {dimension_numbers = #tpu.dot_dimension_numbers<[1], [1], [0], [0], [0, 0, 1, 0], [], []>} : vector<16x32xf32>, vector<16x32xf32>, vector<16x16xf32> -> vector<16x16xf32>
    %255 = arith.addf %254, %10 : vector<16x16xf32>
    %cst_135 = arith.constant dense<0xFF800000> : vector<16xf32>
    %256 = vector.multi_reduction <maximumf>, %255, %cst_135 [1] : vector<16x16xf32> to vector<16xf32>
    %257 = vector.shape_cast %256 : vector<16xf32> to vector<16x1xf32>
    %258 = vector.broadcast %257 : vector<16x1xf32> to vector<16x16xf32>
    %259 = arith.subf %255, %258 : vector<16x16xf32>
    %260 = math.exp %259 : vector<16x16xf32>
    %cst_136 = arith.constant dense<0.000000e+00> : vector<16xf32>
    %261 = vector.multi_reduction <add>, %260, %cst_136 [1] : vector<16x16xf32> to vector<16xf32>
    %262 = vector.shape_cast %261 : vector<16xf32> to vector<16x1xf32>
    %263 = tpu.reciprocal %262 : vector<16x1xf32> -> vector<16x1xf32>
    %264 = vector.broadcast %263 : vector<16x1xf32> to vector<16x16xf32>
    %265 = arith.mulf %260, %264 : vector<16x16xf32>
    %266 = vector.broadcast %14 : vector<1x32xf32> to vector<16x32xf32>
    %267 = arith.mulf %234, %266 : vector<16x32xf32>
    %cst_137 = arith.constant dense<0.000000e+00> : vector<16x32xf32>
    %268 = tpu.matmul %265, %267, %cst_137 {dimension_numbers = #tpu.dot_dimension_numbers<[1], [0], [0], [1], [0, 0, 1, 1], [], []>} : vector<16x16xf32>, vector<16x32xf32>, vector<16x32xf32> -> vector<16x32xf32>
    %269 = arith.addf %251, %268 : vector<16x32xf32>
    %270 = vector.broadcast %16 : vector<1x32xf32> to vector<16x32xf32>
    %271 = arith.mulf %220, %270 : vector<16x32xf32>
    %cst_138 = arith.constant dense<0.000000e+00> : vector<16x16xf32>
    %272 = tpu.matmul %271, %227, %cst_138 {dimension_numbers = #tpu.dot_dimension_numbers<[1], [1], [0], [0], [0, 0, 1, 0], [], []>} : vector<16x32xf32>, vector<16x32xf32>, vector<16x16xf32> -> vector<16x16xf32>
    %273 = arith.addf %272, %10 : vector<16x16xf32>
    %cst_139 = arith.constant dense<0xFF800000> : vector<16xf32>
    %274 = vector.multi_reduction <maximumf>, %273, %cst_139 [1] : vector<16x16xf32> to vector<16xf32>
    %275 = vector.shape_cast %274 : vector<16xf32> to vector<16x1xf32>
    %276 = vector.broadcast %275 : vector<16x1xf32> to vector<16x16xf32>
    %277 = arith.subf %273, %276 : vector<16x16xf32>
    %278 = math.exp %277 : vector<16x16xf32>
    %cst_140 = arith.constant dense<0.000000e+00> : vector<16xf32>
    %279 = vector.multi_reduction <add>, %278, %cst_140 [1] : vector<16x16xf32> to vector<16xf32>
    %280 = vector.shape_cast %279 : vector<16xf32> to vector<16x1xf32>
    %281 = tpu.reciprocal %280 : vector<16x1xf32> -> vector<16x1xf32>
    %282 = vector.broadcast %281 : vector<16x1xf32> to vector<16x16xf32>
    %283 = arith.mulf %278, %282 : vector<16x16xf32>
    %284 = vector.broadcast %16 : vector<1x32xf32> to vector<16x32xf32>
    %285 = arith.mulf %234, %284 : vector<16x32xf32>
    %cst_141 = arith.constant dense<0.000000e+00> : vector<16x32xf32>
    %286 = tpu.matmul %283, %285, %cst_141 {dimension_numbers = #tpu.dot_dimension_numbers<[1], [0], [0], [1], [0, 0, 1, 1], [], []>} : vector<16x16xf32>, vector<16x32xf32>, vector<16x32xf32> -> vector<16x32xf32>
    %287 = arith.addf %269, %286 : vector<16x32xf32>
    %288 = vector.broadcast %18 : vector<1x32xf32> to vector<16x32xf32>
    %289 = arith.mulf %220, %288 : vector<16x32xf32>
    %cst_142 = arith.constant dense<0.000000e+00> : vector<16x16xf32>
    %290 = tpu.matmul %289, %227, %cst_142 {dimension_numbers = #tpu.dot_dimension_numbers<[1], [1], [0], [0], [0, 0, 1, 0], [], []>} : vector<16x32xf32>, vector<16x32xf32>, vector<16x16xf32> -> vector<16x16xf32>
    %291 = arith.addf %290, %10 : vector<16x16xf32>
    %cst_143 = arith.constant dense<0xFF800000> : vector<16xf32>
    %292 = vector.multi_reduction <maximumf>, %291, %cst_143 [1] : vector<16x16xf32> to vector<16xf32>
    %293 = vector.shape_cast %292 : vector<16xf32> to vector<16x1xf32>
    %294 = vector.broadcast %293 : vector<16x1xf32> to vector<16x16xf32>
    %295 = arith.subf %291, %294 : vector<16x16xf32>
    %296 = math.exp %295 : vector<16x16xf32>
    %cst_144 = arith.constant dense<0.000000e+00> : vector<16xf32>
    %297 = vector.multi_reduction <add>, %296, %cst_144 [1] : vector<16x16xf32> to vector<16xf32>
    %298 = vector.shape_cast %297 : vector<16xf32> to vector<16x1xf32>
    %299 = tpu.reciprocal %298 : vector<16x1xf32> -> vector<16x1xf32>
    %300 = vector.broadcast %299 : vector<16x1xf32> to vector<16x16xf32>
    %301 = arith.mulf %296, %300 : vector<16x16xf32>
    %302 = vector.broadcast %18 : vector<1x32xf32> to vector<16x32xf32>
    %303 = arith.mulf %234, %302 : vector<16x32xf32>
    %cst_145 = arith.constant dense<0.000000e+00> : vector<16x32xf32>
    %304 = tpu.matmul %301, %303, %cst_145 {dimension_numbers = #tpu.dot_dimension_numbers<[1], [0], [0], [1], [0, 0, 1, 1], [], []>} : vector<16x16xf32>, vector<16x32xf32>, vector<16x32xf32> -> vector<16x32xf32>
    %305 = arith.addf %287, %304 : vector<16x32xf32>
    %c1_146 = arith.constant 1 : index
    %c0_147 = arith.constant 0 : index
    %c0_148 = arith.constant 0 : index
    %306 = vector.load %arg15[%c1_146, %c0_147, %c0_148] : memref<2x32x32xf32, #tpu.memory_space<vmem>>, vector<1x32x32xf32>
    %307 = vector.shape_cast %306 : vector<1x32x32xf32> to vector<32x32xf32>
    %cst_149 = arith.constant dense<0.000000e+00> : vector<16x32xf32>
    %308 = tpu.matmul %305, %307, %cst_149 {dimension_numbers = #tpu.dot_dimension_numbers<[1], [0], [0], [1], [0, 0, 1, 1], [], []>} : vector<16x32xf32>, vector<32x32xf32>, vector<16x32xf32> -> vector<16x32xf32>
    %309 = arith.addf %189, %308 : vector<16x32xf32>
    %c1_150 = arith.constant 1 : index
    %c0_151 = arith.constant 0 : index
    %c0_152 = arith.constant 0 : index
    %310 = vector.load %arg16[%c1_150, %c0_151, %c0_152] : memref<2x1x32xf32, #tpu.memory_space<vmem>>, vector<1x1x32xf32>
    %311 = vector.shape_cast %310 : vector<1x1x32xf32> to vector<1x32xf32>
    %312 = vector.broadcast %311 : vector<1x32xf32> to vector<16x32xf32>
    %313 = arith.addf %309, %312 : vector<16x32xf32>
    %c1_153 = arith.constant 1 : index
    %c0_154 = arith.constant 0 : index
    %c0_155 = arith.constant 0 : index
    %314 = vector.load %arg17[%c1_153, %c0_154, %c0_155] : memref<2x1x32xf32, #tpu.memory_space<vmem>>, vector<1x1x32xf32>
    %315 = vector.shape_cast %314 : vector<1x1x32xf32> to vector<1x32xf32>
    %c1_156 = arith.constant 1 : index
    %c0_157 = arith.constant 0 : index
    %c0_158 = arith.constant 0 : index
    %316 = vector.load %arg18[%c1_156, %c0_157, %c0_158] : memref<2x1x32xf32, #tpu.memory_space<vmem>>, vector<1x1x32xf32>
    %317 = vector.shape_cast %316 : vector<1x1x32xf32> to vector<1x32xf32>
    %cst_159 = arith.constant dense<0.000000e+00> : vector<16xf32>
    %318 = vector.multi_reduction <add>, %313, %cst_159 [1] : vector<16x32xf32> to vector<16xf32>
    %319 = vector.shape_cast %318 : vector<16xf32> to vector<16x1xf32>
    %cst_160 = arith.constant 3.200000e+01 : f32
    %320 = vector.broadcast %cst_160 : f32 to vector<16x1xf32>
    %321 = arith.divf %319, %320 : vector<16x1xf32>
    %322 = vector.broadcast %321 : vector<16x1xf32> to vector<16x32xf32>
    %323 = arith.subf %313, %322 : vector<16x32xf32>
    %324 = arith.mulf %323, %323 : vector<16x32xf32>
    %cst_161 = arith.constant dense<0.000000e+00> : vector<16xf32>
    %325 = vector.multi_reduction <add>, %324, %cst_161 [1] : vector<16x32xf32> to vector<16xf32>
    %326 = vector.shape_cast %325 : vector<16xf32> to vector<16x1xf32>
    %cst_162 = arith.constant 3.200000e+01 : f32
    %327 = vector.broadcast %cst_162 : f32 to vector<16x1xf32>
    %328 = arith.divf %326, %327 : vector<16x1xf32>
    %cst_163 = arith.constant 9.99999974E-6 : f32
    %329 = vector.broadcast %cst_163 : f32 to vector<16x1xf32>
    %330 = arith.addf %328, %329 : vector<16x1xf32>
    %331 = math.rsqrt %330 : vector<16x1xf32>
    %332 = vector.broadcast %331 : vector<16x1xf32> to vector<16x32xf32>
    %333 = arith.mulf %323, %332 : vector<16x32xf32>
    %334 = vector.broadcast %315 : vector<1x32xf32> to vector<16x32xf32>
    %335 = arith.mulf %333, %334 : vector<16x32xf32>
    %336 = vector.broadcast %317 : vector<1x32xf32> to vector<16x32xf32>
    %337 = arith.addf %335, %336 : vector<16x32xf32>
    %c1_164 = arith.constant 1 : index
    %c0_165 = arith.constant 0 : index
    %c0_166 = arith.constant 0 : index
    %338 = vector.load %arg19[%c1_164, %c0_165, %c0_166] : memref<2x32x128xf32, #tpu.memory_space<vmem>>, vector<1x32x128xf32>
    %339 = vector.shape_cast %338 : vector<1x32x128xf32> to vector<32x128xf32>
    %cst_167 = arith.constant dense<0.000000e+00> : vector<16x128xf32>
    %340 = tpu.matmul %337, %339, %cst_167 {dimension_numbers = #tpu.dot_dimension_numbers<[1], [0], [0], [1], [0, 0, 1, 1], [], []>} : vector<16x32xf32>, vector<32x128xf32>, vector<16x128xf32> -> vector<16x128xf32>
    %c1_168 = arith.constant 1 : index
    %c0_169 = arith.constant 0 : index
    %c0_170 = arith.constant 0 : index
    %341 = vector.load %arg20[%c1_168, %c0_169, %c0_170] : memref<2x1x128xf32, #tpu.memory_space<vmem>>, vector<1x1x128xf32>
    %342 = vector.shape_cast %341 : vector<1x1x128xf32> to vector<1x128xf32>
    %343 = vector.broadcast %342 : vector<1x128xf32> to vector<16x128xf32>
    %344 = arith.addf %340, %343 : vector<16x128xf32>
    %cst_171 = arith.constant 1.702000e+00 : f32
    %345 = vector.broadcast %cst_171 : f32 to vector<16x128xf32>
    %346 = arith.mulf %345, %344 : vector<16x128xf32>
    %347 = arith.negf %346 : vector<16x128xf32>
    %348 = math.exp %347 : vector<16x128xf32>
    %cst_172 = arith.constant 1.000000e+00 : f32
    %349 = vector.broadcast %cst_172 : f32 to vector<16x128xf32>
    %350 = arith.addf %349, %348 : vector<16x128xf32>
    %351 = arith.divf %349, %350 : vector<16x128xf32>
    %352 = arith.mulf %344, %351 : vector<16x128xf32>
    %c1_173 = arith.constant 1 : index
    %c0_174 = arith.constant 0 : index
    %c0_175 = arith.constant 0 : index
    %353 = vector.load %arg21[%c1_173, %c0_174, %c0_175] : memref<2x128x32xf32, #tpu.memory_space<vmem>>, vector<1x128x32xf32>
    %354 = vector.shape_cast %353 : vector<1x128x32xf32> to vector<128x32xf32>
    %cst_176 = arith.constant dense<0.000000e+00> : vector<16x32xf32>
    %355 = tpu.matmul %352, %354, %cst_176 {dimension_numbers = #tpu.dot_dimension_numbers<[1], [0], [0], [1], [0, 0, 1, 1], [], []>} : vector<16x128xf32>, vector<128x32xf32>, vector<16x32xf32> -> vector<16x32xf32>
    %356 = arith.addf %313, %355 : vector<16x32xf32>
    %c1_177 = arith.constant 1 : index
    %c0_178 = arith.constant 0 : index
    %c0_179 = arith.constant 0 : index
    %357 = vector.load %arg22[%c1_177, %c0_178, %c0_179] : memref<2x1x32xf32, #tpu.memory_space<vmem>>, vector<1x1x32xf32>
    %358 = vector.shape_cast %357 : vector<1x1x32xf32> to vector<1x32xf32>
    %359 = vector.broadcast %358 : vector<1x32xf32> to vector<16x32xf32>
    %360 = arith.addf %356, %359 : vector<16x32xf32>
    %c0_180 = arith.constant 0 : index
    %c0_181 = arith.constant 0 : index
    %361 = vector.load %arg23[%c0_180, %c0_181] : memref<1x32xf32, #tpu.memory_space<vmem>>, vector<1x32xf32>
    %c0_182 = arith.constant 0 : index
    %c0_183 = arith.constant 0 : index
    %362 = vector.load %arg24[%c0_182, %c0_183] : memref<1x32xf32, #tpu.memory_space<vmem>>, vector<1x32xf32>
    %cst_184 = arith.constant dense<0.000000e+00> : vector<16xf32>
    %363 = vector.multi_reduction <add>, %360, %cst_184 [1] : vector<16x32xf32> to vector<16xf32>
    %364 = vector.shape_cast %363 : vector<16xf32> to vector<16x1xf32>
    %cst_185 = arith.constant 3.200000e+01 : f32
    %365 = vector.broadcast %cst_185 : f32 to vector<16x1xf32>
    %366 = arith.divf %364, %365 : vector<16x1xf32>
    %367 = vector.broadcast %366 : vector<16x1xf32> to vector<16x32xf32>
    %368 = arith.subf %360, %367 : vector<16x32xf32>
    %369 = arith.mulf %368, %368 : vector<16x32xf32>
    %cst_186 = arith.constant dense<0.000000e+00> : vector<16xf32>
    %370 = vector.multi_reduction <add>, %369, %cst_186 [1] : vector<16x32xf32> to vector<16xf32>
    %371 = vector.shape_cast %370 : vector<16xf32> to vector<16x1xf32>
    %cst_187 = arith.constant 3.200000e+01 : f32
    %372 = vector.broadcast %cst_187 : f32 to vector<16x1xf32>
    %373 = arith.divf %371, %372 : vector<16x1xf32>
    %cst_188 = arith.constant 9.99999974E-6 : f32
    %374 = vector.broadcast %cst_188 : f32 to vector<16x1xf32>
    %375 = arith.addf %373, %374 : vector<16x1xf32>
    %376 = math.rsqrt %375 : vector<16x1xf32>
    %377 = vector.broadcast %376 : vector<16x1xf32> to vector<16x32xf32>
    %378 = arith.mulf %368, %377 : vector<16x32xf32>
    %379 = vector.broadcast %361 : vector<1x32xf32> to vector<16x32xf32>
    %380 = arith.mulf %378, %379 : vector<16x32xf32>
    %381 = vector.broadcast %362 : vector<1x32xf32> to vector<16x32xf32>
    %382 = arith.addf %380, %381 : vector<16x32xf32>
    %c0_189 = arith.constant 0 : index
    %c0_190 = arith.constant 0 : index
    %383 = vector.load %arg26[%c0_189, %c0_190] : memref<16x32xf32, #tpu.memory_space<vmem>>, vector<16x32xf32>
    tpu.vector_store %arg26[%c0_189, %c0_190], %382 {strides = array<i32>} : memref<16x32xf32, #tpu.memory_space<vmem>>, vector<16x32xf32>,
    %384 = tpu.iota {dimensions = array<i32: 1>} : vector<2x16xi32>
    %c0_191 = arith.constant 0 : index
    %c0_192 = arith.constant 0 : index
    %385 = vector.load %arg2[%c0_191, %c0_192] : memref<2x1xi32, #tpu.memory_space<vmem>>, vector<2x1xi32>
    %386 = vector.broadcast %385 : vector<2x1xi32> to vector<2x16xi32>
    %387 = arith.cmpi eq, %384, %386 : vector<2x16xi32>
    %388 = arith.extui %387 : vector<2x16xi1> to vector<2x16xi32>
    %389 = arith.sitofp %388 : vector<2x16xi32> to vector<2x16xf32>
    %cst_193 = arith.constant dense<0.000000e+00> : vector<2x32xf32>
    %390 = tpu.matmul %389, %382, %cst_193 {dimension_numbers = #tpu.dot_dimension_numbers<[1], [0], [0], [1], [0, 0, 1, 1], [], []>} : vector<2x16xf32>, vector<16x32xf32>, vector<2x32xf32> -> vector<2x32xf32>
    %c0_194 = arith.constant 0 : index
    %c0_195 = arith.constant 0 : index
    %391 = vector.load %arg25[%c0_194, %c0_195] : memref<32x32xf32, #tpu.memory_space<vmem>>, vector<32x32xf32>
    %cst_196 = arith.constant dense<0.000000e+00> : vector<2x32xf32>
    %392 = tpu.matmul %390, %391, %cst_196 {dimension_numbers = #tpu.dot_dimension_numbers<[1], [0], [0], [1], [0, 0, 1, 1], [], []>} : vector<2x32xf32>, vector<32x32xf32>, vector<2x32xf32> -> vector<2x32xf32>
    %c0_197 = arith.constant 0 : index
    %c0_198 = arith.constant 0 : index
    %393 = vector.load %arg27[%c0_197, %c0_198] : memref<2x32xf32, #tpu.memory_space<vmem>>, vector<2x32xf32>
    tpu.vector_store %arg27[%c0_197, %c0_198], %392 {strides = array<i32>} : memref<2x32xf32, #tpu.memory_space<vmem>>, vector<2x32xf32>,
    return
  }
  func.func @transform_0(%arg0: i32) -> (i32, i32) {
    %c0_i32 = arith.constant 0 : i32
    %c0_i32_0 = arith.constant 0 : i32
    %c0_i32_1 = arith.constant 0 : i32
    return %c0_i32, %c0_i32_0 : i32, i32
  }
  func.func @transform_1(%arg0: i32) -> (i32, i32) {
    %c0_i32 = arith.constant 0 : i32
    %c0_i32_0 = arith.constant 0 : i32
    %c0_i32_1 = arith.constant 0 : i32
    return %c0_i32, %c0_i32_0 : i32, i32
  }
  func.func @transform_2(%arg0: i32) -> (i32, i32) {
    %c0_i32 = arith.constant 0 : i32
    %c0_i32_0 = arith.constant 0 : i32
    %c0_i32_1 = arith.constant 0 : i32
    return %c0_i32, %c0_i32_0 : i32, i32
  }
  func.func @transform_3(%arg0: i32) -> (i32, i32) {
    %c0_i32 = arith.constant 0 : i32
    %c0_i32_0 = arith.constant 0 : i32
    %c0_i32_1 = arith.constant 0 : i32
    return %c0_i32, %c0_i32_0 : i32, i32
  }
  func.func @transform_4(%arg0: i32) -> (i32, i32, i32) {
    %c0_i32 = arith.constant 0 : i32
    %c0_i32_0 = arith.constant 0 : i32
    %c0_i32_1 = arith.constant 0 : i32
    %c0_i32_2 = arith.constant 0 : i32
    return %c0_i32, %c0_i32_0, %c0_i32_1 : i32, i32, i32
  }
  func.func @transform_5(%arg0: i32) -> (i32, i32) {
    %c0_i32 = arith.constant 0 : i32
    %c0_i32_0 = arith.constant 0 : i32
    %c0_i32_1 = arith.constant 0 : i32
    return %c0_i32, %c0_i32_0 : i32, i32
  }
  func.func @transform_6(%arg0: i32) -> (i32, i32, i32) {
    %c0_i32 = arith.constant 0 : i32
    %c0_i32_0 = arith.constant 0 : i32
    %c0_i32_1 = arith.constant 0 : i32
    %c0_i32_2 = arith.constant 0 : i32
    return %c0_i32, %c0_i32_0, %c0_i32_1 : i32, i32, i32
  }
  func.func @transform_7(%arg0: i32) -> (i32, i32, i32) {
    %c0_i32 = arith.constant 0 : i32
    %c0_i32_0 = arith.constant 0 : i32
    %c0_i32_1 = arith.constant 0 : i32
    %c0_i32_2 = arith.constant 0 : i32
    return %c0_i32, %c0_i32_0, %c0_i32_1 : i32, i32, i32
  }
  func.func @transform_8(%arg0: i32) -> (i32, i32, i32) {
    %c0_i32 = arith.constant 0 : i32
    %c0_i32_0 = arith.constant 0 : i32
    %c0_i32_1 = arith.constant 0 : i32
    %c0_i32_2 = arith.constant 0 : i32
    return %c0_i32, %c0_i32_0, %c0_i32_1 : i32, i32, i32
  }
  func.func @transform_9(%arg0: i32) -> (i32, i32, i32) {
    %c0_i32 = arith.constant 0 : i32
    %c0_i32_0 = arith.constant 0 : i32
    %c0_i32_1 = arith.constant 0 : i32
    %c0_i32_2 = arith.constant 0 : i32
    return %c0_i32, %c0_i32_0, %c0_i32_1 : i32, i32, i32
  }
  func.func @transform_10(%arg0: i32) -> (i32, i32, i32) {
    %c0_i32 = arith.constant 0 : i32
    %c0_i32_0 = arith.constant 0 : i32
    %c0_i32_1 = arith.constant 0 : i32
    %c0_i32_2 = arith.constant 0 : i32
    return %c0_i32, %c0_i32_0, %c0_i32_1 : i32, i32, i32
  }
  func.func @transform_11(%arg0: i32) -> (i32, i32, i32) {
    %c0_i32 = arith.constant 0 : i32
    %c0_i32_0 = arith.constant 0 : i32
    %c0_i32_1 = arith.constant 0 : i32
    %c0_i32_2 = arith.constant 0 : i32
    return %c0_i32, %c0_i32_0, %c0_i32_1 : i32, i32, i32
  }
  func.func @transform_12(%arg0: i32) -> (i32, i32, i32) {
    %c0_i32 = arith.constant 0 : i32
    %c0_i32_0 = arith.constant 0 : i32
    %c0_i32_1 = arith.constant 0 : i32
    %c0_i32_2 = arith.constant 0 : i32
    return %c0_i32, %c0_i32_0, %c0_i32_1 : i32, i32, i32
  }
  func.func @transform_13(%arg0: i32) -> (i32, i32, i32) {
    %c0_i32 = arith.constant 0 : i32
    %c0_i32_0 = arith.constant 0 : i32
    %c0_i32_1 = arith.constant 0 : i32
    %c0_i32_2 = arith.constant 0 : i32
    return %c0_i32, %c0_i32_0, %c0_i32_1 : i32, i32, i32
  }
  func.func @transform_14(%arg0: i32) -> (i32, i32, i32) {
    %c0_i32 = arith.constant 0 : i32
    %c0_i32_0 = arith.constant 0 : i32
    %c0_i32_1 = arith.constant 0 : i32
    %c0_i32_2 = arith.constant 0 : i32
    return %c0_i32, %c0_i32_0, %c0_i32_1 : i32, i32, i32
  }
  func.func @transform_15(%arg0: i32) -> (i32, i32, i32) {
    %c0_i32 = arith.constant 0 : i32
    %c0_i32_0 = arith.constant 0 : i32
    %c0_i32_1 = arith.constant 0 : i32
    %c0_i32_2 = arith.constant 0 : i32
    return %c0_i32, %c0_i32_0, %c0_i32_1 : i32, i32, i32
  }
  func.func @transform_16(%arg0: i32) -> (i32, i32, i32) {
    %c0_i32 = arith.constant 0 : i32
    %c0_i32_0 = arith.constant 0 : i32
    %c0_i32_1 = arith.constant 0 : i32
    %c0_i32_2 = arith.constant 0 : i32
    return %c0_i32, %c0_i32_0, %c0_i32_1 : i32, i32, i32
  }
  func.func @transform_17(%arg0: i32) -> (i32, i32, i32) {
    %c0_i32 = arith.constant 0 : i32
    %c0_i32_0 = arith.constant 0 : i32
    %c0_i32_1 = arith.constant 0 : i32
    %c0_i32_2 = arith.constant 0 : i32
    return %c0_i32, %c0_i32_0, %c0_i32_1 : i32, i32, i32
  }
  func.func @transform_18(%arg0: i32) -> (i32, i32, i32) {
    %c0_i32 = arith.constant 0 : i32
    %c0_i32_0 = arith.constant 0 : i32
    %c0_i32_1 = arith.constant 0 : i32
    %c0_i32_2 = arith.constant 0 : i32
    return %c0_i32, %c0_i32_0, %c0_i32_1 : i32, i32, i32
  }
  func.func @transform_19(%arg0: i32) -> (i32, i32, i32) {
    %c0_i32 = arith.constant 0 : i32
    %c0_i32_0 = arith.constant 0 : i32
    %c0_i32_1 = arith.constant 0 : i32
    %c0_i32_2 = arith.constant 0 : i32
    return %c0_i32, %c0_i32_0, %c0_i32_1 : i32, i32, i32
  }
  func.func @transform_20(%arg0: i32) -> (i32, i32, i32) {
    %c0_i32 = arith.constant 0 : i32
    %c0_i32_0 = arith.constant 0 : i32
    %c0_i32_1 = arith.constant 0 : i32
    %c0_i32_2 = arith.constant 0 : i32
    return %c0_i32, %c0_i32_0, %c0_i32_1 : i32, i32, i32
  }
  func.func @transform_21(%arg0: i32) -> (i32, i32, i32) {
    %c0_i32 = arith.constant 0 : i32
    %c0_i32_0 = arith.constant 0 : i32
    %c0_i32_1 = arith.constant 0 : i32
    %c0_i32_2 = arith.constant 0 : i32
    return %c0_i32, %c0_i32_0, %c0_i32_1 : i32, i32, i32
  }
  func.func @transform_22(%arg0: i32) -> (i32, i32) {
    %c0_i32 = arith.constant 0 : i32
    %c0_i32_0 = arith.constant 0 : i32
    %c0_i32_1 = arith.constant 0 : i32
    return %c0_i32, %c0_i32_0 : i32, i32
  }
  func.func @transform_23(%arg0: i32) -> (i32, i32) {
    %c0_i32 = arith.constant 0 : i32
    %c0_i32_0 = arith.constant 0 : i32
    %c0_i32_1 = arith.constant 0 : i32
    return %c0_i32, %c0_i32_0 : i32, i32
  }
  func.func @transform_24(%arg0: i32) -> (i32, i32) {
    %c0_i32 = arith.constant 0 : i32
    %c0_i32_0 = arith.constant 0 : i32
    %c0_i32_1 = arith.constant 0 : i32
    return %c0_i32, %c0_i32_0 : i32, i32
  }
  func.func @transform_25(%arg0: i32) -> (i32, i32) {
    %c0_i32 = arith.constant 0 : i32
    %c0_i32_0 = arith.constant 0 : i32
    %c0_i32_1 = arith.constant 0 : i32
    return %c0_i32, %c0_i32_0 : i32, i32
  }
  func.func @transform_26(%arg0: i32) -> (i32, i32) {
    %c0_i32 = arith.constant 0 : i32
    %c0_i32_0 = arith.constant 0 : i32
    %c0_i32_1 = arith.constant 0 : i32
    return %c0_i32, %c0_i32_0 : i32, i32
  }
}

</mosaic_0001>

<bundles_post_ra>
// kernel: text_clip_forward.1
= control target key start
LH: loop header
LB: loop body
LE: loop exit
PB: predicated region body
PF: predicated region fallthrough
CT: control target
= control target key end

     0   :  { %s5221_s0 = inlined_call_operand.vmem [shape: s32[16,1], index: 0, kind: input, shape index: {}]   ;;  %s5222_s1 = inlined_call_operand.vmem [shape: s32[2,1], index: 1, kind: input, shape index: {}]   ;;  %s5223_s2 = inlined_call_operand.vmem [shape: f32[64,32], index: 2, kind: input, shape index: {}]   ;;  %s5224_s3 = inlined_call_operand.vmem [shape: f32[16,32], index: 3, kind: input, shape index: {}]   ;;  %s5225_s4 = inlined_call_operand.vmem [shape: f32[4,1,32], index: 4, kind: input, shape index: {}]   ;;  %s5226_s5 = inlined_call_operand.vmem [shape: f32[16,16], index: 5, kind: input, shape index: {}]   ;;  %s5227_s6 = inlined_call_operand.vmem [shape: f32[2,1,32], index: 6, kind: input, shape index: {}]   ;;  %s5228_s7 = inlined_call_operand.vmem [shape: f32[2,1,32], index: 7, kind: input, shape index: {}]   ;;  %s5229_s8 = inlined_call_operand.vmem [shape: f32[2,32,32], index: 8, kind: input, shape index: {}]   ;;  %s5230_s9 = inlined_call_operand.vmem [shape: f32[2,1,32], index: 9, kind: input, shape index: {}]   ;;  %s5231_s10 = inlined_call_operand.vmem [shape: f32[2,32,32], index: 10, kind: input, shape index: {}]   ;;  %s5232_s11 = inlined_call_operand.vmem [shape: f32[2,1,32], index: 11, kind: input, shape index: {}]   ;;  %s5233_s12 = inlined_call_operand.vmem [shape: f32[2,32,32], index: 12, kind: input, shape index: {}]   ;;  %s5234_s13 = inlined_call_operand.vmem [shape: f32[2,1,32], index: 13, kind: input, shape index: {}]   ;;  %s5235_s14 = inlined_call_operand.vmem [shape: f32[2,32,32], index: 14, kind: input, shape index: {}]   ;;  %s5236_s15 = inlined_call_operand.vmem [shape: f32[2,1,32], index: 15, kind: input, shape index: {}]   ;;  %s5237_s16 = inlined_call_operand.vmem [shape: f32[2,1,32], index: 16, kind: input, shape index: {}]   ;;  %s5238_s17 = inlined_call_operand.vmem [shape: f32[2,1,32], index: 17, kind: input, shape index: {}]   ;;  %s5239_s18 = inlined_call_operand.vmem [shape: f32[2,32,128], index: 18, kind: input, shape index: {}]   ;;  %s5240_s19 = inlined_call_operand.vmem [shape: f32[2,1,128], index: 19, kind: input, shape index: {}]   ;;  %s5241_s20 = inlined_call_operand.vmem [shape: f32[2,128,32], index: 20, kind: input, shape index: {}]   ;;  %s5242_s21 = inlined_call_operand.vmem [shape: f32[2,1,32], index: 21, kind: input, shape index: {}]   ;;  %s5243_s22 = inlined_call_operand.vmem [shape: f32[1,32], index: 22, kind: input, shape index: {}]   ;;  %s5244_s23 = inlined_call_operand.vmem [shape: f32[1,32], index: 23, kind: input, shape index: {}]   ;;  %s5245_s24 = inlined_call_operand.vmem [shape: f32[32,32], index: 24, kind: input, shape index: {}]   ;;  %s5246_s25 = inlined_call_operand.hbm [shape: f32[16,32], index: 25, kind: output, shape index: {0}]   ;;  %s5247_s26 = inlined_call_operand.hbm [shape: f32[2,32], index: 26, kind: output, shape index: {1}]  }
   0x1   :  { %5258 = sst [smem:[#allocation8_spill]] %s5221_s0 }
   0x2   :  { %5259 = sst [smem:[#allocation9_spill]] %s5222_s1 }
   0x3   :  { %5260 = sst [smem:[#allocation10_spill]] %s5223_s2 }
   0x4   :  { %5261 = sst [smem:[#allocation11_spill]] %s5224_s3 }
   0x5   :  { %5262 = sst [smem:[#allocation12_spill]] %s5225_s4 }
   0x6   :  { %5263 = sst [smem:[#allocation13_spill]] %s5226_s5 }
   0x7   :  { %5264 = sst [smem:[#allocation14_spill]] %s5227_s6 }
   0x8   :  { %5265 = sst [smem:[#allocation15_spill]] %s5228_s7 }
   0x9   :  { %5266 = sst [smem:[#allocation16_spill]] %s5229_s8 }
   0xa   :  { %5267 = sst [smem:[#allocation17_spill]] %s5230_s9 }
   0xb   :  { %5268 = sst [smem:[#allocation18_spill]] %s5231_s10 }
   0xc   :  { %32 = vsyncpa [#allocation3], 0  ;;  %s5269_s7 = sld [smem:[#allocation8_spill]]  ;;  %s5270_s4 = sld [smem:[#allocation10_spill]]  ;;  %v4399_v2 = vmov 0  }
   0xd   :  { %4249 = vset.pattern.permute.xlu0 %v4399_v2  ;;  %4250 = vset.pattern.permute.xlu1 %v4399_v2 }
  0x12   :  { %v84_v0 = vld [vmem:[%s5269_s7] sm:$0xff]  ;;  %v101_v3 = vld [vmem:[%s5270_s4 + $0x8] sm:$0xff]  ;;  %v102_v4 = vld [vmem:[%s5270_s4 + $0x10] sm:$0xff] }
  0x13   :  { %v100_v1 = vld [vmem:[%s5270_s4] sm:$0xff]  ;;  %v103_v5 = vld [vmem:[%s5270_s4 + $0x18] sm:$0xff]  ;;  %89 = vperm.xlu0 %4249, %v84_v0   ;;  %v85_v6 = vld [vmem:[%s5269_s7 + $0x8] sm:$0xff] }
  0x14   :  { %v3980_v7 = vpack.c.bf16 %v101_v3, %v100_v1  ;;  %v3984_v8 = vpack.c.bf16 %v103_v5, %v102_v4  ;;  %v104_v9 = vld [vmem:[%s5270_s4 + $0x20] sm:$0xff]  ;;  %v105_v10 = vld [vmem:[%s5270_s4 + $0x28] sm:$0xff] }
  0x15   :  { %33 = vsyncpa [#allocation5], 0  ;;  %v3988_v11 = vpack.c.bf16 %v105_v10, %v104_v9  ;;  %v106_v12 = vld [vmem:[%s5270_s4 + $0x30] sm:$0xff]  ;;  %v107_v13 = vld [vmem:[%s5270_s4 + $0x38] sm:$0xff]  ;;  %v86_v15 = vlaneseq  ;;  %vm110_vm0 = vcmask 523264   ;;  %v4400_v18 = vmov 0.0  }
  0x16   :  { %3981 = vmatprep.subr.bf16.mxu0 %v3980_v7  ;;  %v3992_v14 = vpack.c.bf16 %v107_v13, %v106_v12  ;;  %s5271_s30 = sld [smem:[#allocation11_spill]]  ;;  %vm203_vm3 = vcmask 261120   ;;  %s5272_s1 = sld [smem:[#allocation16_spill]]  ;;  %v425_v4 = vld [vmem:[%s5233_s12] sm:$0xff]  ;;  %v426_v5 = vld [vmem:[%s5233_s12 + $0x8] sm:$0xff]  ;;  %vm606_vm5 = vcmask 130048  }
  0x17   :  { %3983 = vmatpush3.bf16.msra.mxu0 %v3980_v7  ;;  %92 = vperm.xlu0 %4249, %v85_v6   ;;  %v4572_v16 = vand.u32 127, %v86_v15  ;;  %s5273_s9 = sld [smem:[#allocation18_spill]]  ;;  %s5274_s6 = sld [smem:[#allocation14_spill]]  ;;  %v4012_v6 = vpack.c.bf16 %v426_v5, %v425_v4  ;;  %v427_v7 = vld [vmem:[%s5233_s12 + $0x10] sm:$0xff]  ;;  %vm4670_vm4 = vmpackc.low %vm203_vm3, %vm203_vm3  ;;  %vm4402_vm6 = vmmov 0  }
  0x18   :  { %3985 = vmatprep.subr.bf16.mxu0 %v3984_v8  ;;  %s5275_s28 = sld [smem:[#allocation15_spill]]  ;;  %s5276_s0 = sld [smem:[#allocation17_spill]] }
  0x19   :  { %s5277_s2 = sld [smem:[#allocation12_spill]]  ;;  %s5280_s27 = sld [smem:[#allocation13_spill]] }
  0x1b   :  { %3987 = vmatpush3.bf16.msra.mxu0 %v3984_v8  ;;  %v428_v8 = vld [vmem:[%s5233_s12 + $0x18] sm:$0xff] }
  0x1c   :  { %3989 = vmatprep.subr.bf16.mxu0 %v3988_v11  ;;  %v108_v22 = vld [vmem:[%s5271_s30] sm:$0xff]  ;;  %v109_v24 = vld [vmem:[%s5271_s30 + $0x8] sm:$0xff]  ;;  %v249_v42 = vld [vmem:[%s5272_s1 + $0x10] sm:$0xff]  ;;  %v4016_v9 = vpack.c.bf16 %v428_v8, %v427_v7 }
  0x1d   :  { %v247_v40 = vld [vmem:[%s5272_s1] sm:$0xff]  ;;  %v248_v41 = vld [vmem:[%s5272_s1 + $0x8] sm:$0xff]  ;;  %v250_v44 = vld [vmem:[%s5272_s1 + $0x18] sm:$0xff] }
  0x1e   :  { %v3996_v43 = vpack.c.bf16 %v248_v41, %v247_v40  ;;  %v4000_v45 = vpack.c.bf16 %v250_v44, %v249_v42  ;;  %v339_v46 = vld [vmem:[%s5273_s9] sm:$0xff]  ;;  %v340_v47 = vld [vmem:[%s5273_s9 + $0x8] sm:$0xff]  ;;  %v341_v63 = vld [vmem:[%s5273_s9 + $0x10] sm:$0xff] }
  0x1f   :  { %3991 = vmatpush3.bf16.msra.mxu0 %v3988_v11  ;;  %v4004_v48 = vpack.c.bf16 %v340_v47, %v339_v46  ;;  %v3326_v56 = vld [vmem:[%s5274_s6] ss:$0 sm:$0xff]  ;;  %v342_v0 = vld [vmem:[%s5273_s9 + $0x18] sm:$0xff]  ;;  %v4655_v13 = vld [vmem:[%s5277_s2 + $0x1] ss:$0 sm:$0xff] }
  0x20   :  { %3993 = vmatprep.subr.bf16.mxu0 %v3992_v14  ;;  %3997 = vmatprep.subr.bf16.mxu1 %v3996_v43  ;;  %v3327_v58 = vld [vmem:[%s5275_s28] ss:$0 sm:$0xff]  ;;  %v4008_v3 = vpack.c.bf16 %v342_v0, %v341_v63 }
  0x21   :  { %3999 = vmatpush3.bf16.msra.mxu1 %v3996_v43  ;;  %v3328_v10 = vld [vmem:[%s5276_s0] ss:$0 sm:$0xff] }
  0x22   :  { %4001 = vmatprep.subr.bf16.mxu1 %v4000_v45  ;;  %v4650_v12 = vld [vmem:[%s5277_s2] ss:$0 sm:$0xff] }
  0x23   :  { %3995 = vmatpush3.bf16.msra.mxu0 %v3992_v14 }
  0x25   :  { %4003 = vmatpush3.bf16.msra.mxu1 %v4000_v45 }
  0x26   :  { %4005 = vmatprep.subr.bf16.mxu1 %v4004_v48 }
  0x92   :  { %v90_v17 = vpop.permute.xlu0 %89 }
  0x93   :  { %vm94_vm1 = vcmp.eq.s32.totalorder %v4572_v16, %v90_v17 }
  0x94   :  { %v3319_v19 = vsel %vm94_vm1, 1.0, %v4400_v18 }
  0x95   :  { %3667 = vmatprep.mubr.msk.f32.mxu0 %vm110_vm0, %v3319_v19 }
  0x96   :  { %v93_v20 = vpop.permute.xlu0 %92 }
  0x97   :  { %vm95_vm2 = vcmp.eq.s32.totalorder %v4572_v16, %v93_v20  ;;  %v3331_v20 = vld [vmem:[%s5232_s11] ss:$0 sm:$0xff] }
  0x98   :  { %v3320_v21 = vsel %vm95_vm2, 1.0, %v4400_v18 }
  0x99   :  { %3668 = vmatmul.mubr.msk.f32.vlgmr.msra.gmra.mrb[0].mxu0 %vm110_vm0, %v3320_v21 }
 0x16c   :  { %v3669_v23 = vpop.f32.mrb[0].mxu0 }
 0x16d   :  { %v183_v25 = vpop.f32.mrb[1].mxu0  ;;  %v4586_v27 = vadd.f32 %v3669_v23, %v109_v24 }
 0x16e   :  { %v4584_v26 = vadd.f32 %v183_v25, %v108_v22 }
 0x16f   :  { %v207_v29 = vsel %vm203_vm3, %v4586_v27, 0.0 }
 0x170   :  { %v204_v28 = vsel %vm203_vm3, %v4584_v26, 0.0 }
 0x171   :  { %205 = vadd.xlane.f32.xlu1 %v204_v28 }
 0x175   :  { %208 = vadd.xlane.f32.xlu1 %v207_v29 }
 0x1fe   :  { %v206_v30 = vpop.xlane.xlu1 %205 }
 0x1ff   :  { %v211_v31 = vmul.f32 0.03125, %v206_v30  ;;  %v3334_v30 = vld [vmem:[%s5234_s13] ss:$0 sm:$0xff] }
 0x201   :  { %v213_v32 = vsub.f32 %v4584_v26, %v211_v31 }
 0x202   :  { %v209_v33 = vpop.xlane.xlu1 %208 }
 0x203   :  { %v212_v34 = vmul.f32 0.03125, %v209_v33  ;;  %v215_v35 = vmul.f32 %v213_v32, %v213_v32 }
 0x205   :  { %v214_v36 = vsub.f32 %v4586_v27, %v212_v34  ;;  %v217_v37 = vsel %vm203_vm3, %v215_v35, 0.0  ;;  %v4699_v34 = vld [vmem:[%s5277_s2 + $0x2] ss:$0 sm:$0xff]  ;;  %v4704_v35 = vld [vmem:[%s5277_s2 + $0x3] ss:$0 sm:$0xff] }
 0x206   :  { %218 = vadd.xlane.f32.xlu0 %v217_v37 }
 0x207   :  { %v216_v38 = vmul.f32 %v214_v36, %v214_v36 }
 0x209   :  { %v220_v39 = vsel %vm203_vm3, %v216_v38, 0.0 }
 0x20a   :  { %221 = vadd.xlane.f32.xlu1 %v220_v39 }
 0x293   :  { %v219_v49 = vpop.xlane.xlu0 %218 }
 0x294   :  { %v223_v50 = vmul.f32 0.03125, %v219_v49 }
 0x296   :  { %v225_v51 = vadd.f32 1e-05, %v223_v50 }
 0x297   :  { %v222_v52 = vpop.xlane.xlu1 %221 }
 0x298   :  { %4251 = vrsqrt.f32 %v225_v51  ;;  %v224_v53 = vmul.f32 0.03125, %v222_v52 }
 0x29a   :  { %v226_v54 = vadd.f32 1e-05, %v224_v53  ;;  %v4739_v53 = vld [vmem:[%s5280_s27] sm:$0xff] }
 0x29c   :  { %4253 = vrsqrt.f32 %v226_v54 }
 0x2a2   :  { %v4252_v55 = vpop.eup %4251 }
 0x2a3   :  { %v229_v57 = vmul.f32 %v4252_v55, %v213_v32 }
 0x2a5   :  { %v237_v59 = vmul.f32 %v3326_v56, %v229_v57 }
 0x2a6   :  { %v4254_v60 = vpop.eup %4253 }
 0x2a7   :  { %v230_v61 = vmul.f32 %v4254_v60, %v214_v36  ;;  %v245_v62 = vadd.f32 %v3327_v58, %v237_v59 }
 0x2a9   :  { %v238_v1 = vmul.f32 %v3326_v56, %v230_v61  ;;  %3678 = vmatprep.mubr.msk.f32.mxu1 %vm203_vm3, %v245_v62  ;;  %v4744_v56 = vld [vmem:[%s5280_s27 + $0x8] sm:$0xff] }
 0x2ab   :  { %v246_v2 = vadd.f32 %v3327_v58, %v238_v1 }
 0x2ad   :  { %3679 = vmatmul.mubr.msk.f32.vlgmr.msra.gmra.mrb[0].mxu1 %vm203_vm3, %v246_v2 }
 0x2ae   :  { %4007 = vmatpush3.bf16.msra.mxu1 %v4004_v48  ;;  %3689 = vmatprep.mubr.msk.f32.mxu1 %vm203_vm3, %v245_v62 }
 0x2af   :  { %4009 = vmatprep.subr.bf16.mxu1 %v4008_v3 }
 0x2b2   :  { %4011 = vmatpush3.bf16.msra.mxu1 %v4008_v3 }
 0x2b3   :  { %4013 = vmatprep.subr.bf16.mxu1 %v4012_v6 }
 0x2b5   :  { %3690 = vmatmul.mubr.msk.f32.vlgmr.msra.gmra.mrb[2].mxu1 %vm203_vm3, %v246_v2 }
 0x2b6   :  { %4015 = vmatpush3.bf16.msra.mxu1 %v4012_v6  ;;  %3700 = vmatprep.mubr.msk.f32.mxu1 %vm203_vm3, %v245_v62 }
 0x2b7   :  { %4017 = vmatprep.subr.bf16.mxu1 %v4016_v9 }
 0x2ba   :  { %4019 = vmatpush3.bf16.msra.mxu1 %v4016_v9 }
 0x2bd   :  { %3701 = vmatmul.mubr.msk.f32.vlgmr.msra.gmra.mrb[4].mxu1 %vm203_vm3, %v246_v2 }
 0x380   :  { %v3680_v11 = vpop.f32.mrb[0].mxu1 }
 0x381   :  { %v330_v14 = vpop.f32.mrb[1].mxu1  ;;  %v4676_v29 = vadd.f32 %v3680_v11, %v3328_v10 }
 0x382   :  { %v4657_v15 = vadd.f32 %v3328_v10, %v330_v14 }
 0x383   :  { %v518_v36 = vmul.f32 %v4650_v12, %v4676_v29  ;;  %v638_v37 = vmul.f32 %v4655_v13, %v4676_v29  ;;  %v913_v52 = vmul.f32 %v4699_v34, %v4676_v29 }
 0x384   :  { %v517_v17 = vmul.f32 %v4650_v12, %v4657_v15  ;;  %v637_v19 = vmul.f32 %v4655_v13, %v4657_v15  ;;  %v912_v47 = vmul.f32 %v4699_v34, %v4657_v15 }
 0x386   :  { %3707 = vmatprep.mubr.msk.f32.mxu1 %vm203_vm3, %v517_v17  ;;  %3714 = vmatprep.mubr.msk.f32.mxu0 %vm203_vm3, %v637_v19 }
 0x388   :  { %v3691_v21 = vpop.f32.mrb[2].mxu1 }
 0x389   :  { %v422_v22 = vadd.f32 %v3691_v21, %v3331_v20  ;;  %v416_v23 = vpop.f32.mrb[3].mxu1 }
 0x38a   :  { %v417_v24 = vadd.f32 %v3331_v20, %v416_v23 }
 0x38c   :  { %v4674_v28 = vpack.c.bf16 %v422_v22, %v417_v24 }
 0x38e   :  { %4022 = vmatprep.subr.msk.bf16.mxu1 %vm4670_vm4, %v4674_v28  ;;  %4028 = vmatprep.subr.msk.bf16.mxu0 %vm4670_vm4, %v4674_v28 }
 0x38f   :  { %4025 = vmatpush3.bf16.xpose.msk.msra.mxu1 %vm4670_vm4, %v4674_v28  ;;  %4031 = vmatpush3.bf16.xpose.msk.msra.mxu0 %vm4670_vm4, %v4674_v28 }
 0x390   :  { %v3702_v31 = vpop.f32.mrb[4].mxu1  ;;  %4042 = vmatprep.subr.msk.bf16.mxu0 %vm4670_vm4, %v4674_v28 }
 0x391   :  { %v508_v32 = vadd.f32 %v3702_v31, %v3334_v30  ;;  %v502_v33 = vpop.f32.mrb[5].mxu1 }
 0x392   :  { %v503_v38 = vadd.f32 %v3334_v30, %v502_v33 }
 0x393   :  { %v743_v39 = vmul.f32 %v4655_v13, %v508_v32  ;;  %v630_v40 = vmul.f32 %v4650_v12, %v508_v32  ;;  %v1018_v41 = vmul.f32 %v4699_v34, %v508_v32  ;;  %v1214_v42 = vmul.f32 %v4704_v35, %v508_v32 }
 0x394   :  { %v742_v43 = vmul.f32 %v4655_v13, %v503_v38  ;;  %v629_v44 = vmul.f32 %v4650_v12, %v503_v38  ;;  %v1017_v45 = vmul.f32 %v4699_v34, %v503_v38  ;;  %v1213_v46 = vmul.f32 %v4704_v35, %v503_v38 }
 0x396   :  { %3708 = vmatmul.mubr.msk.f32.vlgmr.msra.gmra.mrb[6].mxu1 %vm203_vm3, %v518_v36  ;;  %3715 = vmatmul.mubr.msk.f32.vlgmr.msra.gmra.mrb[2].mxu0 %vm203_vm3, %v638_v37  ;;  %v4032_v48 = vpack.c.bf16 %v743_v39, %v742_v43  ;;  %v4722_v49 = vpack.c.bf16 %v630_v40, %v629_v44  ;;  %v4724_v50 = vpack.c.bf16 %v1018_v41, %v1017_v45 }
 0x397   :  { %4045 = vmatpush3.bf16.xpose.msk.msra.mxu0 %vm4670_vm4, %v4674_v28  ;;  %3735 = vmatprep.mubr.msk.f32.mxu0 %vm203_vm3, %v912_v47  ;;  %v4730_v51 = vpack.c.bf16 %v1214_v42, %v1213_v46 }
 0x398   :  { %4033 = vmatprep.subr.bf16.mxu1 %v4032_v48 }
 0x399   :  { %4035 = vmatpush3.bf16.msra.mxu1 %v4032_v48 }
 0x39a   :  { %4037 = vmatprep.subr.bf16.mxu1 %v4722_v49 }
 0x39e   :  { %3736 = vmatmul.mubr.msk.f32.vlgmr.msra.gmra.mrb[4].mxu0 %vm203_vm3, %v913_v52 }
 0x469   :  { %v3709_v54 = vpop.f32.mrb[6].mxu1  ;;  %v3716_v55 = vpop.f32.mrb[2].mxu0 }
 0x46a   :  { %v597_v57 = vpop.f32.mrb[7].mxu1  ;;  %v711_v58 = vpop.f32.mrb[3].mxu0  ;;  %v717_v60 = vadd.f32 %v3716_v55, %v4744_v56  ;;  %v603_v2 = vadd.f32 %v3709_v54, %v4744_v56 }
 0x46b   :  { %v712_v59 = vadd.f32 %v711_v58, %v4739_v53  ;;  %v598_v62 = vadd.f32 %v597_v57, %v4739_v53 }
 0x46c   :  { %v723_v0 = vsel %vm606_vm5, %v717_v60, -inf  ;;  %v610_v5 = vsel %vm606_vm5, %v603_v2, -inf }
 0x46d   :  { %v720_v61 = vsel %vm606_vm5, %v712_v59, -inf  ;;  %v607_v3 = vsel %vm606_vm5, %v598_v62, -inf }
 0x46e   :  { %721 = vmax.xlane.f32.xlu1 %v720_v61 }
 0x471   :  { %v3737_v63 = vpop.f32.mrb[4].mxu0 }
 0x472   :  { %v986_v1 = vpop.f32.mrb[5].mxu0  ;;  %724 = vmax.xlane.f32.xlu1 %v723_v0  ;;  %v992_v6 = vadd.f32 %v3737_v63, %v4744_v56 }
 0x473   :  { %v987_v4 = vadd.f32 %v986_v1, %v4739_v53 }
 0x474   :  { %v998_v8 = vsel %vm606_vm5, %v992_v6, -inf }
 0x475   :  { %v995_v7 = vsel %vm606_vm5, %v987_v4, -inf }
 0x476   :  { %608 = vmax.xlane.f32.xlu1 %v607_v3 }
 0x47a   :  { %611 = vmax.xlane.f32.xlu1 %v610_v5 }
 0x47e   :  { %996 = vmax.xlane.f32.xlu1 %v995_v7 }
 0x482   :  { %999 = vmax.xlane.f32.xlu1 %v998_v8 }
 0x4fb   :  { %v722_v9 = vpop.xlane.xlu1 %721 }
 0x4fc   :  { %v726_v10 = vsub.f32 %v712_v59, %v722_v9  ;;  %v1108_v9 = vmul.f32 %v4704_v35, %v4657_v15 }
 0x4fe   :  { %v728_v11 = vmul.f32 1.442695, %v726_v10 }
 0x4ff   :  { %v725_v14 = vpop.xlane.xlu1 %724 }
 0x500   :  { %4255 = vpow2.f32 %v728_v11  ;;  %v727_v17 = vsub.f32 %v717_v60, %v725_v14 }
 0x502   :  { %v730_v19 = vmul.f32 1.442695, %v727_v17 }
 0x503   :  { %v609_v20 = vpop.xlane.xlu1 %608 }
 0x504   :  { %4257 = vpow2.f32 %v730_v19  ;;  %v613_v21 = vsub.f32 %v598_v62, %v609_v20 }
 0x506   :  { %v615_v22 = vmul.f32 1.442695, %v613_v21 }
 0x507   :  { %v612_v23 = vpop.xlane.xlu1 %611 }
 0x508   :  { %4259 = vpow2.f32 %v615_v22  ;;  %v614_v24 = vsub.f32 %v603_v2, %v612_v23 }
 0x50a   :  { %v4256_v30 = vpop.eup %4255  ;;  %v617_v31 = vmul.f32 1.442695, %v614_v24 }
 0x50b   :  { %v997_v32 = vpop.xlane.xlu1 %996  ;;  %v732_v33 = vsel %vm606_vm5, %v4256_v30, 0.0 }
 0x50c   :  { %4261 = vpow2.f32 %v617_v31  ;;  %v1001_v36 = vsub.f32 %v987_v4, %v997_v32  ;;  %733 = vadd.xlane.f32.xlu1 %v732_v33  ;;  %v1298_v32 = vld [vmem:[%s5235_s14] sm:$0xff]  ;;  %v1299_v33 = vld [vmem:[%s5235_s14 + $0x8] sm:$0xff] }
 0x50e   :  { %v4258_v37 = vpop.eup %4257  ;;  %v1003_v38 = vmul.f32 1.442695, %v1001_v36  ;;  %v1300_v36 = vld [vmem:[%s5235_s14 + $0x10] sm:$0xff] }
 0x50f   :  { %v1000_v39 = vpop.xlane.xlu1 %999  ;;  %v735_v40 = vsel %vm606_vm5, %v4258_v37, 0.0 }
 0x510   :  { %4263 = vpow2.f32 %v1003_v38  ;;  %v1002_v41 = vsub.f32 %v992_v6, %v1000_v39  ;;  %736 = vadd.xlane.f32.xlu0 %v735_v40  ;;  %v1301_v38 = vld [vmem:[%s5235_s14 + $0x18] sm:$0xff] }
 0x511   :  { %v4064_v39 = vpack.c.bf16 %v1301_v38, %v1300_v36  ;;  %v1549_v38 = vld [vmem:[%s5241_s20 + $0x18] sm:$0xff] }
 0x512   :  { %v4260_v42 = vpop.eup %4259  ;;  %v1005_v43 = vmul.f32 1.442695, %v1002_v41 }
 0x513   :  { %v619_v44 = vsel %vm606_vm5, %v4260_v42, 0.0 }
 0x514   :  { %4265 = vpow2.f32 %v1005_v43  ;;  %620 = vadd.xlane.f32.xlu1 %v619_v44 }
 0x516   :  { %v4262_v45 = vpop.eup %4261 }
 0x517   :  { %v622_v46 = vsel %vm606_vm5, %v4262_v45, 0.0 }
 0x518   :  { %623 = vadd.xlane.f32.xlu0 %v622_v46 }
 0x51a   :  { %v4264_v47 = vpop.eup %4263 }
 0x51b   :  { %v1007_v48 = vsel %vm606_vm5, %v4264_v47, 0.0 }
 0x51c   :  { %1008 = vadd.xlane.f32.xlu1 %v1007_v48 }
 0x51e   :  { %v4266_v52 = vpop.eup %4265 }
 0x51f   :  { %v1010_v54 = vsel %vm606_vm5, %v4266_v52, 0.0 }
 0x520   :  { %1011 = vadd.xlane.f32.xlu0 %v1010_v54 }
 0x599   :  { %v734_v55 = vpop.xlane.xlu1 %733 }
 0x59a   :  { %4267 = vrcp.f32 %v734_v55 }
 0x59d   :  { %v737_v57 = vpop.xlane.xlu0 %736 }
 0x59e   :  { %4269 = vrcp.f32 %v737_v57 }
 0x5a1   :  { %v621_v58 = vpop.xlane.xlu1 %620 }
 0x5a2   :  { %4271 = vrcp.f32 %v621_v58 }
 0x5a4   :  { %v4268_v59 = vpop.eup %4267 }
 0x5a5   :  { %v624_v60 = vpop.xlane.xlu0 %623  ;;  %v740_v61 = vmul.f32 %v4268_v59, %v4256_v30 }
 0x5a6   :  { %4273 = vrcp.f32 %v624_v60 }
 0x5a7   :  { %3721 = vmatprep.mubr.msk.f32.mxu1 %vm606_vm5, %v740_v61 }
 0x5a8   :  { %v4270_v62 = vpop.eup %4269 }
 0x5a9   :  { %v741_v63 = vmul.f32 %v4270_v62, %v4258_v37  ;;  %v1009_v0 = vpop.xlane.xlu1 %1008  ;;  %v4060_v37 = vpack.c.bf16 %v1299_v33, %v1298_v32  ;;  %v1546_v32 = vld [vmem:[%s5241_s20] sm:$0xff]  ;;  %v1547_v33 = vld [vmem:[%s5241_s20 + $0x8] sm:$0xff] }
 0x5aa   :  { %4275 = vrcp.f32 %v1009_v0  ;;  %v4076_v36 = vpack.c.bf16 %v1547_v33, %v1546_v32 }
 0x5ab   :  { %3722 = vmatmul.mubr.msk.f32.vlgmr.msra.gmra.mrb[8].mxu1 %vm606_vm5, %v741_v63  ;;  %4061 = vmatprep.subr.bf16.mxu0 %v4060_v37 }
 0x5ac   :  { %v4272_v1 = vpop.eup %4271  ;;  %4039 = vmatpush3.bf16.msra.mxu1 %v4722_v49  ;;  %4063 = vmatpush3.bf16.msra.mxu0 %v4060_v37  ;;  %v1548_v37 = vld [vmem:[%s5241_s20 + $0x10] sm:$0xff] }
 0x5ad   :  { %4047 = vmatprep.subr.bf16.mxu1 %v4724_v50  ;;  %v1012_v2 = vpop.xlane.xlu0 %1011  ;;  %v627_v3 = vmul.f32 %v4272_v1, %v4260_v42  ;;  %4065 = vmatprep.subr.bf16.mxu0 %v4064_v39 }
 0x5ae   :  { %4277 = vrcp.f32 %v1012_v2 }
 0x5af   :  { %3728 = vmatprep.mubr.msk.f32.mxu1 %vm606_vm5, %v627_v3 }
 0x5b0   :  { %v4274_v4 = vpop.eup %4273  ;;  %4067 = vmatpush3.bf16.msra.mxu0 %v4064_v39  ;;  %v4080_v39 = vpack.c.bf16 %v1549_v38, %v1548_v37 }
 0x5b1   :  { %v628_v5 = vmul.f32 %v4274_v4, %v4262_v45 }
 0x5b3   :  { %3729 = vmatmul.mubr.msk.f32.vlgmr.msra.gmra.mrb[8].mxu1 %vm606_vm5, %v628_v5 }
 0x5b4   :  { %v4276_v6 = vpop.eup %4275  ;;  %4049 = vmatpush3.bf16.msra.mxu1 %v4724_v50  ;;  %v1109_v50 = vmul.f32 %v4704_v35, %v4676_v29 }
 0x5b5   :  { %4052 = vmatprep.subr.msk.bf16.mxu1 %vm4670_vm4, %v4674_v28  ;;  %v1015_v7 = vmul.f32 %v4276_v6, %v4264_v47  ;;  %v1438_v6 = vld [vmem:[%s5239_s18] sm:$0xff] }
 0x5b7   :  { %3742 = vmatprep.mubr.msk.f32.mxu1 %vm606_vm5, %v1015_v7  ;;  %v1439_v7 = vld [vmem:[%s5239_s18 + $0x8] sm:$0xff] }
 0x5b8   :  { %v4278_v49 = vpop.eup %4277 }
 0x5b9   :  { %v1016_v8 = vmul.f32 %v4278_v49, %v4266_v52  ;;  %v3367_v52 = vld [vmem:[%s5236_s15] ss:$0 sm:$0xff]  ;;  %v4068_v49 = vpack.c.bf16 %v1439_v7, %v1438_v6 }
 0x5bb   :  { %3743 = vmatmul.mubr.msk.f32.vlgmr.msra.gmra.mrb[8].mxu1 %vm606_vm5, %v1016_v8  ;;  %4069 = vmatprep.subr.bf16.mxu0 %v4068_v49  ;;  %v1440_v8 = vld [vmem:[%s5239_s18 + $0x10] sm:$0xff] }
 0x5bc   :  { %3749 = vmatprep.mubr.msk.f32.mxu1 %vm203_vm3, %v1108_v9  ;;  %v1441_v9 = vld [vmem:[%s5239_s18 + $0x18] sm:$0xff] }
 0x5bd   :  { %4055 = vmatpush3.bf16.xpose.msk.msra.mxu1 %vm4670_vm4, %v4674_v28 }
 0x5be   :  { %4057 = vmatprep.subr.bf16.mxu1 %v4730_v51 }
 0x5c4   :  { %3750 = vmatmul.mubr.msk.f32.vlgmr.msra.gmra.mrb[10].mxu1 %vm203_vm3, %v1109_v50  ;;  %v4072_v50 = vpack.c.bf16 %v1441_v9, %v1440_v8 }
 0x5c5   :  { %4059 = vmatpush3.bf16.msra.mxu1 %v4730_v51 }
 0x5c6   :  { %4077 = vmatprep.subr.bf16.mxu1 %v4076_v36 }
 0x697   :  { %v3751_v10 = vpop.f32.mrb[10].mxu1 }
 0x698   :  { %v1188_v15 = vadd.f32 %v3751_v10, %v4744_v56  ;;  %v1182_v11 = vpop.f32.mrb[11].mxu1 }
 0x699   :  { %v1183_v14 = vadd.f32 %v1182_v11, %v4739_v53 }
 0x69a   :  { %v1194_v17 = vsel %vm606_vm5, %v1188_v15, -inf }
 0x69b   :  { %1195 = vmax.xlane.f32.xlu0 %v1194_v17  ;;  %v1191_v28 = vsel %vm606_vm5, %v1183_v14, -inf }
 0x69c   :  { %1192 = vmax.xlane.f32.xlu1 %v1191_v28 }
 0x728   :  { %v1196_v19 = vpop.xlane.xlu0 %1195 }
 0x729   :  { %v1198_v20 = vsub.f32 %v1188_v15, %v1196_v19  ;;  %v1193_v21 = vpop.xlane.xlu1 %1192 }
 0x72a   :  { %v1197_v29 = vsub.f32 %v1183_v14, %v1193_v21 }
 0x72b   :  { %v1201_v22 = vmul.f32 1.442695, %v1198_v20  ;;  %v3368_v20 = vld [vmem:[%s5237_s16] ss:$0 sm:$0xff] }
 0x72c   :  { %v1199_v23 = vmul.f32 1.442695, %v1197_v29 }
 0x72d   :  { %4279 = vpow2.f32 %v1201_v22 }
 0x72e   :  { %4281 = vpow2.f32 %v1199_v23  ;;  %v3369_v23 = vld [vmem:[%s5238_s17] ss:$0 sm:$0xff] }
 0x737   :  { %v4280_v51 = vpop.eup %4279 }
 0x738   :  { %v4282_v24 = vpop.eup %4281  ;;  %v1206_v30 = vsel %vm606_vm5, %v4280_v51, 0.0 }
 0x739   :  { %1207 = vadd.xlane.f32.xlu0 %v1206_v30  ;;  %v1203_v31 = vsel %vm606_vm5, %v4282_v24, 0.0 }
 0x73a   :  { %1204 = vadd.xlane.f32.xlu1 %v1203_v31 }
 0x7c6   :  { %v1208_v40 = vpop.xlane.xlu0 %1207 }
 0x7c7   :  { %4283 = vrcp.f32 %v1208_v40  ;;  %v1205_v41 = vpop.xlane.xlu1 %1204  ;;  %v1550_v40 = vld [vmem:[%s5241_s20 + $0x20] sm:$0xff] }
 0x7c8   :  { %4285 = vrcp.f32 %v1205_v41  ;;  %v1551_v41 = vld [vmem:[%s5241_s20 + $0x28] sm:$0xff] }
 0x7d1   :  { %v4284_v42 = vpop.eup %4283 }
 0x7d2   :  { %v4286_v43 = vpop.eup %4285  ;;  %v1212_v45 = vmul.f32 %v4284_v42, %v4280_v51  ;;  %v4084_v42 = vpack.c.bf16 %v1551_v41, %v1550_v40  ;;  %v3381_v40 = vld [vmem:[%s5272_s1 + $0x28] sm:$0xff] }
 0x7d3   :  { %v1211_v44 = vmul.f32 %v4286_v43, %v4282_v24  ;;  %v1552_v43 = vld [vmem:[%s5241_s20 + $0x30] sm:$0xff] }
 0x7d5   :  { %3756 = vmatprep.mubr.msk.f32.mxu1 %vm606_vm5, %v1211_v44  ;;  %v1553_v44 = vld [vmem:[%s5241_s20 + $0x38] sm:$0xff] }
 0x7d6   :  { %3757 = vmatmul.mubr.msk.f32.vlgmr.msra.gmra.mrb[8].mxu1 %vm606_vm5, %v1212_v45  ;;  %v4088_v45 = vpack.c.bf16 %v1553_v44, %v1552_v43  ;;  %v3383_v43 = vld [vmem:[%s5272_s1 + $0x38] sm:$0xff] }
 0x7d7   :  { %4079 = vmatpush3.bf16.msra.mxu1 %v4076_v36 }
 0x7d8   :  { %4081 = vmatprep.subr.bf16.mxu1 %v4080_v39 }
 0x7db   :  { %4083 = vmatpush3.bf16.msra.mxu1 %v4080_v39  ;;  %v3380_v39 = vld [vmem:[%s5272_s1 + $0x20] sm:$0xff] }
 0x7dc   :  { %4085 = vmatprep.subr.bf16.mxu1 %v4084_v42  ;;  %v4108_v41 = vpack.c.bf16 %v3381_v40, %v3380_v39 }
 0x7df   :  { %4087 = vmatpush3.bf16.msra.mxu1 %v4084_v42  ;;  %v3382_v42 = vld [vmem:[%s5272_s1 + $0x30] sm:$0xff] }
 0x7e0   :  { %4089 = vmatprep.subr.bf16.mxu1 %v4088_v45  ;;  %v4112_v44 = vpack.c.bf16 %v3383_v43, %v3382_v42 }
 0x7e3   :  { %4091 = vmatpush3.bf16.msra.mxu1 %v4088_v45  ;;  %v3388_v45 = vld [vmem:[%s5273_s9 + $0x20] sm:$0xff] }
 0x8a9   :  { %v3758_v46 = vpop.f32.mrb[8].mxu1 }
 0x8aa   :  { %v1287_v47 = vpop.f32.mrb[9].mxu1 }
 0x8ab   :  { %3767 = vmatprep.mubr.msk.f32.mxu0 %vm203_vm3, %v1287_v47  ;;  %v1555_v47 = vld [vmem:[%s5241_s20 + $0x48] sm:$0xff] }
 0x8ac   :  { %3768 = vmatmul.mubr.msk.f32.vlgmr.msra.gmra.mrb[6].mxu0 %vm203_vm3, %v3758_v46  ;;  %v1554_v46 = vld [vmem:[%s5241_s20 + $0x40] sm:$0xff] }
 0x8ad   :  { %4071 = vmatpush3.bf16.msra.mxu0 %v4068_v49 }
 0x8ae   :  { %4073 = vmatprep.subr.bf16.mxu0 %v4072_v50 }
 0x8b1   :  { %4075 = vmatpush3.bf16.msra.mxu0 %v4072_v50 }
 0x8b2   :  { %4109 = vmatprep.subr.bf16.mxu0 %v4108_v41 }
 0x97f   :  { %v3769_v48 = vpop.f32.mrb[6].mxu0 }
 0x980   :  { %v1384_v54 = vadd.f32 %v3769_v48, %v4586_v27  ;;  %v1374_v55 = vpop.f32.mrb[7].mxu0  ;;  %v4092_v48 = vpack.c.bf16 %v1555_v47, %v1554_v46  ;;  %v3389_v46 = vld [vmem:[%s5273_s9 + $0x28] sm:$0xff] }
 0x981   :  { %v1383_v57 = vadd.f32 %v1374_v55, %v4584_v26  ;;  %v4116_v47 = vpack.c.bf16 %v3389_v46, %v3388_v45 }
 0x982   :  { %v4814_v58 = vadd.f32 %v3367_v52, %v1384_v54  ;;  %4093 = vmatprep.subr.bf16.mxu1 %v4092_v48  ;;  %v1557_v54 = vld [vmem:[%s5241_s20 + $0x58] sm:$0xff] }
 0x983   :  { %v4816_v59 = vadd.f32 %v3367_v52, %v1383_v57  ;;  %4095 = vmatpush3.bf16.msra.mxu1 %v4092_v48  ;;  %v1556_v52 = vld [vmem:[%s5241_s20 + $0x50] sm:$0xff]  ;;  %v1558_v57 = vld [vmem:[%s5241_s20 + $0x60] sm:$0xff] }
 0x984   :  { %v1399_v60 = vsel %vm203_vm3, %v4814_v58, 0.0  ;;  %v4096_v55 = vpack.c.bf16 %v1557_v54, %v1556_v52 }
 0x985   :  { %1400 = vadd.xlane.f32.xlu0 %v1399_v60  ;;  %v1396_v61 = vsel %vm203_vm3, %v4816_v59, 0.0  ;;  %v1559_v60 = vld [vmem:[%s5241_s20 + $0x68] sm:$0xff] }
 0x986   :  { %1397 = vadd.xlane.f32.xlu1 %v1396_v61  ;;  %4097 = vmatprep.subr.bf16.mxu1 %v4096_v55  ;;  %v4100_v61 = vpack.c.bf16 %v1559_v60, %v1558_v57 }
 0x987   :  { %4099 = vmatpush3.bf16.msra.mxu1 %v4096_v55 }
 0x988   :  { %4101 = vmatprep.subr.bf16.mxu1 %v4100_v61 }
 0x98b   :  { %4103 = vmatpush3.bf16.msra.mxu1 %v4100_v61 }
 0xa12   :  { %v1401_v62 = vpop.xlane.xlu0 %1400 }
 0xa13   :  { %v1403_v63 = vmul.f32 0.03125, %v1401_v62  ;;  %v1398_v0 = vpop.xlane.xlu1 %1397  ;;  %v1560_v62 = vld [vmem:[%s5241_s20 + $0x70] sm:$0xff] }
 0xa14   :  { %v1402_v1 = vmul.f32 0.03125, %v1398_v0 }
 0xa15   :  { %v1405_v27 = vsub.f32 %v4814_v58, %v1403_v63  ;;  %v1561_v63 = vld [vmem:[%s5241_s20 + $0x78] sm:$0xff] }
 0xa16   :  { %v1404_v26 = vsub.f32 %v4816_v59, %v1402_v1  ;;  %v4104_v0 = vpack.c.bf16 %v1561_v63, %v1560_v62  ;;  %v3370_v1 = vld [vmem:[%s5240_s19] ss:$0 sm:$0xff]  ;;  %v3378_v62 = vld [vmem:[%s5274_s6 + $0x1] ss:$0 sm:$0xff] }
 0xa17   :  { %v1407_v2 = vmul.f32 %v1405_v27, %v1405_v27 }
 0xa18   :  { %v1406_v3 = vmul.f32 %v1404_v26, %v1404_v26  ;;  %4105 = vmatprep.subr.bf16.mxu1 %v4104_v0 }
 0xa19   :  { %v1411_v4 = vsel %vm203_vm3, %v1407_v2, 0.0  ;;  %4107 = vmatpush3.bf16.msra.mxu1 %v4104_v0 }
 0xa1a   :  { %1412 = vadd.xlane.f32.xlu0 %v1411_v4  ;;  %v1408_v5 = vsel %vm203_vm3, %v1406_v3, 0.0 }
 0xa1b   :  { %1409 = vadd.xlane.f32.xlu1 %v1408_v5 }
 0xaa7   :  { %v1413_v10 = vpop.xlane.xlu0 %1412 }
 0xaa8   :  { %v1415_v15 = vmul.f32 0.03125, %v1413_v10  ;;  %v1410_v11 = vpop.xlane.xlu1 %1409 }
 0xaa9   :  { %v1414_v14 = vmul.f32 0.03125, %v1410_v11 }
 0xaaa   :  { %v1417_v17 = vadd.f32 1e-05, %v1415_v15 }
 0xaab   :  { %v1416_v28 = vadd.f32 1e-05, %v1414_v14 }
 0xaac   :  { %4287 = vrsqrt.f32 %v1417_v17 }
 0xaad   :  { %4289 = vrsqrt.f32 %v1416_v28  ;;  %v3375_v28 = vld [vmem:[%s5242_s21] ss:$0 sm:$0xff] }
 0xab6   :  { %v4288_v19 = vpop.eup %4287 }
 0xab7   :  { %v4290_v21 = vpop.eup %4289  ;;  %v1421_v29 = vmul.f32 %v4288_v19, %v1405_v27 }
 0xab8   :  { %v1420_v22 = vmul.f32 %v4290_v21, %v1404_v26 }
 0xab9   :  { %v1429_v51 = vmul.f32 %v3368_v20, %v1421_v29 }
 0xaba   :  { %v1428_v24 = vmul.f32 %v3368_v20, %v1420_v22 }
 0xabb   :  { %v1437_v31 = vadd.f32 %v3369_v23, %v1429_v51 }
 0xabc   :  { %v1436_v30 = vadd.f32 %v3369_v23, %v1428_v24 }
 0xabe   :  { %3778 = vmatprep.mubr.msk.f32.mxu0 %vm203_vm3, %v1436_v30 }
 0xabf   :  { %3779 = vmatmul.mubr.msk.f32.vlgmr.msra.gmra.mrb[8].mxu0 %vm203_vm3, %v1437_v31 }
 0xac0   :  { %4111 = vmatpush3.bf16.msra.mxu0 %v4108_v41 }
 0xac1   :  { %4113 = vmatprep.subr.bf16.mxu0 %v4112_v44 }
 0xac4   :  { %4115 = vmatpush3.bf16.msra.mxu0 %v4112_v44 }
 0xac5   :  { %4117 = vmatprep.subr.bf16.mxu0 %v4116_v47 }
 0xb92   :  { %v3780_v27 = vpop.f32.mrb[8].mxu0 }
 0xb93   :  { %v1527_v26 = vadd.f32 %v3780_v27, %v3370_v1  ;;  %v1521_v2 = vpop.f32.mrb[9].mxu0  ;;  %v3379_v27 = vld [vmem:[%s5275_s28 + $0x1] ss:$0 sm:$0xff] }
 0xb94   :  { %v1522_v3 = vadd.f32 %v3370_v1, %v1521_v2 }
 0xb95   :  { %v3374_v4 = vmul.f32 -1.702, %v1527_v26 }
 0xb96   :  { %v3373_v5 = vmul.f32 -1.702, %v1522_v3 }
 0xb97   :  { %v1536_v6 = vmul.f32 1.442695, %v3374_v4  ;;  %v3391_v4 = vld [vmem:[%s5273_s9 + $0x38] sm:$0xff] }
 0xb98   :  { %v1534_v7 = vmul.f32 1.442695, %v3373_v5 }
 0xb99   :  { %4291 = vpow2.f32 %v1536_v6 }
 0xb9a   :  { %4293 = vpow2.f32 %v1534_v7 }
 0xba3   :  { %v4292_v49 = vpop.eup %4291 }
 0xba4   :  { %v4294_v8 = vpop.eup %4293  ;;  %v1539_v9 = vadd.f32 1.0, %v4292_v49  ;;  %v3396_v49 = vld [vmem:[%s5233_s12 + $0x20] sm:$0xff] }
 0xba5   :  { %v1538_v50 = vadd.f32 1.0, %v4294_v8  ;;  %v3397_v8 = vld [vmem:[%s5233_s12 + $0x28] sm:$0xff] }
 0xba6   :  { %4295 = vrcp.f32 %v1539_v9  ;;  %v4124_v9 = vpack.c.bf16 %v3397_v8, %v3396_v49 }
 0xba7   :  { %4297 = vrcp.f32 %v1538_v50  ;;  %v3398_v50 = vld [vmem:[%s5233_s12 + $0x30] sm:$0xff] }
 0xbb0   :  { %v4296_v10 = vpop.eup %4295 }
 0xbb1   :  { %v4298_v15 = vpop.eup %4297  ;;  %v1545_v14 = vmul.f32 %v4296_v10, %v1527_v26  ;;  %v3399_v10 = vld [vmem:[%s5233_s12 + $0x38] sm:$0xff] }
 0xbb2   :  { %v1544_v11 = vmul.f32 %v4298_v15, %v1522_v3  ;;  %v3390_v3 = vld [vmem:[%s5273_s9 + $0x30] sm:$0xff]  ;;  %v4128_v15 = vpack.c.bf16 %v3399_v10, %v3398_v50 }
 0xbb3   :  { %v4120_v7 = vpack.c.bf16 %v3391_v4, %v3390_v3 }
 0xbb4   :  { %3813 = vmatprep.mubr.f32.mxu1 %v1544_v11  ;;  %v3385_v11 = vld [vmem:[%s5276_s0 + $0x1] ss:$0 sm:$0xff] }
 0xbb5   :  { %3814 = vmatmul.mubr.f32.vlgmr.msra.gmra.mrb[12].mxu1 %v1545_v14 }
 0xc88   :  { %v3815_v17 = vpop.f32.mrb[12].mxu1 }
 0xc89   :  { %v1638_v19 = vadd.f32 %v3815_v17, %v4814_v58  ;;  %v1628_v20 = vpop.f32.mrb[13].mxu1 }
 0xc8a   :  { %v1637_v21 = vadd.f32 %v1628_v20, %v4816_v59 }
 0xc8b   :  { %v4902_v29 = vadd.f32 %v3375_v28, %v1638_v19 }
 0xc8c   :  { %v4904_v22 = vadd.f32 %v3375_v28, %v1637_v21  ;;  %v3393_v21 = vld [vmem:[%s5232_s11 + $0x1] ss:$0 sm:$0xff] }
 0xc8d   :  { %v1655_v23 = vsel %vm203_vm3, %v4902_v29, 0.0 }
 0xc8e   :  { %1656 = vadd.xlane.f32.xlu0 %v1655_v23  ;;  %v1652_v51 = vsel %vm203_vm3, %v4904_v22, 0.0 }
 0xc8f   :  { %1653 = vadd.xlane.f32.xlu1 %v1652_v51 }
 0xd1b   :  { %v1657_v24 = vpop.xlane.xlu0 %1656 }
 0xd1c   :  { %v1659_v30 = vmul.f32 0.03125, %v1657_v24  ;;  %v1654_v31 = vpop.xlane.xlu1 %1653 }
 0xd1d   :  { %v1658_v32 = vmul.f32 0.03125, %v1654_v31 }
 0xd1e   :  { %v1661_v58 = vsub.f32 %v4902_v29, %v1659_v30 }
 0xd1f   :  { %v1660_v59 = vsub.f32 %v4904_v22, %v1658_v32 }
 0xd20   :  { %v1663_v33 = vmul.f32 %v1661_v58, %v1661_v58 }
 0xd21   :  { %v1662_v36 = vmul.f32 %v1660_v59, %v1660_v59 }
 0xd22   :  { %v1667_v37 = vsel %vm203_vm3, %v1663_v33, 0.0 }
 0xd23   :  { %1668 = vadd.xlane.f32.xlu0 %v1667_v37  ;;  %v1664_v38 = vsel %vm203_vm3, %v1662_v36, 0.0 }
 0xd24   :  { %1665 = vadd.xlane.f32.xlu1 %v1664_v38 }
 0xdb0   :  { %v1669_v48 = vpop.xlane.xlu0 %1668 }
 0xdb1   :  { %v1671_v52 = vmul.f32 0.03125, %v1669_v48  ;;  %v1666_v54 = vpop.xlane.xlu1 %1665 }
 0xdb2   :  { %v1670_v55 = vmul.f32 0.03125, %v1666_v54 }
 0xdb3   :  { %v1673_v57 = vadd.f32 1e-05, %v1671_v52 }
 0xdb4   :  { %v1672_v60 = vadd.f32 1e-05, %v1670_v55 }
 0xdb5   :  { %4299 = vrsqrt.f32 %v1673_v57 }
 0xdb6   :  { %4301 = vrsqrt.f32 %v1672_v60 }
 0xdbf   :  { %v4300_v61 = vpop.eup %4299 }
 0xdc0   :  { %v4302_v63 = vpop.eup %4301  ;;  %v1677_v0 = vmul.f32 %v4300_v61, %v1661_v58  ;;  %v3401_v58 = vld [vmem:[%s5234_s13 + $0x1] ss:$0 sm:$0xff]  ;;  %s4403_s13 = smov [#allocation2]  }
 0xdc1   :  { %v1676_v1 = vmul.f32 %v4302_v63, %v1660_v59  ;;  %s3294_s2 = sshll.u32 %s4403_s13, 4  ;;  %s3295_s2 = int_to_ptr.vmem [resolvable:$true] %s3294_s2 }
 0xdc2   :  { %v1685_v26 = vmul.f32 %v3378_v62, %v1677_v0  ;;  %p4356_p1 = scmp.lt.s32.totalorder %s3295_s2, %s3295_s2 }
 0xdc3   :  { %v1684_v2 = vmul.f32 %v3378_v62, %v1676_v1 }
 0xdc4   :  { %v1693_v6 = vadd.f32 %v3379_v27, %v1685_v26 }
 0xdc5   :  { %v1692_v5 = vadd.f32 %v3379_v27, %v1684_v2 }
 0xdc7   :  { %3824 = vmatprep.mubr.msk.f32.mxu0 %vm203_vm3, %v1692_v5 }
 0xdc8   :  { %3825 = vmatmul.mubr.msk.f32.vlgmr.msra.gmra.mrb[10].mxu0 %vm203_vm3, %v1693_v6 }
 0xdc9   :  { %4119 = vmatpush3.bf16.msra.mxu0 %v4116_v47  ;;  %3835 = vmatprep.mubr.msk.f32.mxu0 %vm203_vm3, %v1692_v5 }
 0xdca   :  { %4121 = vmatprep.subr.bf16.mxu0 %v4120_v7 }
 0xdcd   :  { %4123 = vmatpush3.bf16.msra.mxu0 %v4120_v7 }
 0xdce   :  { %4125 = vmatprep.subr.bf16.mxu0 %v4124_v9 }
 0xdd0   :  { %3836 = vmatmul.mubr.msk.f32.vlgmr.msra.gmra.mrb[12].mxu0 %vm203_vm3, %v1693_v6 }
 0xdd1   :  { %4127 = vmatpush3.bf16.msra.mxu0 %v4124_v9  ;;  %3846 = vmatprep.mubr.msk.f32.mxu0 %vm203_vm3, %v1692_v5 }
 0xdd2   :  { %4129 = vmatprep.subr.bf16.mxu0 %v4128_v15 }
 0xdd5   :  { %4131 = vmatpush3.bf16.msra.mxu0 %v4128_v15 }
 0xdd8   :  { %3847 = vmatmul.mubr.msk.f32.vlgmr.msra.gmra.mrb[14].mxu0 %vm203_vm3, %v1693_v6 }
 0xe9b   :  { %v3826_v14 = vpop.f32.mrb[10].mxu0 }
 0xe9c   :  { %v1779_v17 = vpop.f32.mrb[11].mxu0  ;;  %v1785_v32 = vadd.f32 %v3826_v14, %v3385_v11 }
 0xe9d   :  { %v1780_v28 = vadd.f32 %v3385_v11, %v1779_v17 }
 0xe9e   :  { %v1965_v37 = vmul.f32 %v4650_v12, %v1785_v32  ;;  %v2078_v38 = vmul.f32 %v4655_v13, %v1785_v32  ;;  %v2537_v60 = vmul.f32 %v4704_v35, %v1785_v32 }
 0xe9f   :  { %v1964_v19 = vmul.f32 %v4650_v12, %v1780_v28  ;;  %v2077_v20 = vmul.f32 %v4655_v13, %v1780_v28  ;;  %v2346_v48 = vmul.f32 %v4699_v34, %v1780_v28  ;;  %v2536_v57 = vmul.f32 %v4704_v35, %v1780_v28 }
 0xea1   :  { %3853 = vmatprep.mubr.msk.f32.mxu0 %vm203_vm3, %v1964_v19  ;;  %3860 = vmatprep.mubr.msk.f32.mxu1 %vm203_vm3, %v2077_v20 }
 0xea3   :  { %v3837_v23 = vpop.f32.mrb[12].mxu0 }
 0xea4   :  { %v1873_v51 = vadd.f32 %v3837_v23, %v3393_v21  ;;  %v1867_v24 = vpop.f32.mrb[13].mxu0 }
 0xea5   :  { %v1868_v30 = vadd.f32 %v3393_v21, %v1867_v24 }
 0xea7   :  { %v4132_v31 = vpack.c.bf16 %v1873_v51, %v1868_v30 }
 0xea9   :  { %4134 = vmatprep.subr.msk.bf16.mxu0 %vm4670_vm4, %v4132_v31  ;;  %4140 = vmatprep.subr.msk.bf16.mxu1 %vm4670_vm4, %v4132_v31 }
 0xeaa   :  { %4137 = vmatpush3.bf16.xpose.msk.msra.mxu0 %vm4670_vm4, %v4132_v31  ;;  %4143 = vmatpush3.bf16.xpose.msk.msra.mxu1 %vm4670_vm4, %v4132_v31 }
 0xeab   :  { %v3848_v59 = vpop.f32.mrb[14].mxu0  ;;  %4154 = vmatprep.subr.msk.bf16.mxu1 %vm4670_vm4, %v4132_v31 }
 0xeac   :  { %v1961_v33 = vadd.f32 %v3848_v59, %v3401_v58  ;;  %v1955_v36 = vpop.f32.mrb[15].mxu0 }
 0xead   :  { %v1956_v39 = vadd.f32 %v3401_v58, %v1955_v36 }
 0xeae   :  { %v2183_v40 = vmul.f32 %v4655_v13, %v1961_v33  ;;  %v2076_v41 = vmul.f32 %v4650_v12, %v1961_v33  ;;  %v2452_v42 = vmul.f32 %v4699_v34, %v1961_v33  ;;  %v2642_v43 = vmul.f32 %v4704_v35, %v1961_v33 }
 0xeaf   :  { %v2182_v44 = vmul.f32 %v4655_v13, %v1956_v39  ;;  %v2075_v45 = vmul.f32 %v4650_v12, %v1956_v39  ;;  %v2451_v46 = vmul.f32 %v4699_v34, %v1956_v39  ;;  %v2641_v47 = vmul.f32 %v4704_v35, %v1956_v39 }
 0xeb0   :  { %v2347_v13 = vmul.f32 %v4699_v34, %v1785_v32 }
 0xeb1   :  { %3854 = vmatmul.mubr.msk.f32.vlgmr.msra.gmra.mrb[16].mxu0 %vm203_vm3, %v1965_v37  ;;  %3861 = vmatmul.mubr.msk.f32.vlgmr.msra.gmra.mrb[14].mxu1 %vm203_vm3, %v2078_v38  ;;  %v4144_v52 = vpack.c.bf16 %v2183_v40, %v2182_v44  ;;  %v4998_v54 = vpack.c.bf16 %v2076_v41, %v2075_v45  ;;  %v5000_v55 = vpack.c.bf16 %v2452_v42, %v2451_v46 }
 0xeb2   :  { %4157 = vmatpush3.bf16.xpose.msk.msra.mxu1 %vm4670_vm4, %v4132_v31  ;;  %3881 = vmatprep.mubr.msk.f32.mxu1 %vm203_vm3, %v2346_v48  ;;  %v5005_v12 = vpack.c.bf16 %v2642_v43, %v2641_v47 }
 0xeb3   :  { %4145 = vmatprep.subr.bf16.mxu0 %v4144_v52  ;;  %4164 = vmatprep.subr.msk.bf16.mxu1 %vm4670_vm4, %v4132_v31 }
 0xeb4   :  { %4147 = vmatpush3.bf16.msra.mxu0 %v4144_v52 }
 0xeb5   :  { %4149 = vmatprep.subr.bf16.mxu0 %v4998_v54 }
 0xeb9   :  { %3882 = vmatmul.mubr.msk.f32.vlgmr.msra.gmra.mrb[16].mxu1 %vm203_vm3, %v2347_v13 }
 0xeba   :  { %4167 = vmatpush3.bf16.xpose.msk.msra.mxu1 %vm4670_vm4, %v4132_v31  ;;  %3895 = vmatprep.mubr.msk.f32.mxu1 %vm203_vm3, %v2536_v57 }
 0xec1   :  { %3896 = vmatmul.mubr.msk.f32.vlgmr.msra.gmra.mrb[18].mxu1 %vm203_vm3, %v2537_v60 }
 0xf84   :  { %v3855_v61 = vpop.f32.mrb[16].mxu0  ;;  %v3862_v62 = vpop.f32.mrb[14].mxu1 }
 0xf85   :  { %v2157_v63 = vadd.f32 %v3862_v62, %v4744_v56  ;;  %v2044_v0 = vpop.f32.mrb[17].mxu0  ;;  %v2151_v1 = vpop.f32.mrb[15].mxu1  ;;  %v2050_v27 = vadd.f32 %v3855_v61, %v4744_v56 }
 0xf86   :  { %v2152_v34 = vadd.f32 %v2151_v1, %v4739_v53  ;;  %v2045_v25 = vadd.f32 %v2044_v0, %v4739_v53 }
 0xf87   :  { %v2163_v26 = vsel %vm606_vm5, %v2157_v63, -inf  ;;  %v2056_v35 = vsel %vm606_vm5, %v2050_v27, -inf }
 0xf88   :  { %2164 = vmax.xlane.f32.xlu0 %v2163_v26  ;;  %v2160_v2 = vsel %vm606_vm5, %v2152_v34, -inf  ;;  %v2053_v4 = vsel %vm606_vm5, %v2045_v25, -inf }
 0xf89   :  { %2161 = vmax.xlane.f32.xlu1 %v2160_v2 }
 0xf8c   :  { %v3883_v3 = vpop.f32.mrb[16].mxu1  ;;  %2057 = vmax.xlane.f32.xlu0 %v2056_v35 }
 0xf8d   :  { %v2426_v5 = vadd.f32 %v3883_v3, %v4744_v56  ;;  %v2420_v6 = vpop.f32.mrb[17].mxu1  ;;  %2054 = vmax.xlane.f32.xlu1 %v2053_v4 }
 0xf8e   :  { %v2421_v7 = vadd.f32 %v2420_v6, %v4739_v53 }
 0xf8f   :  { %v2432_v49 = vsel %vm606_vm5, %v2426_v5, -inf }
 0xf90   :  { %2433 = vmax.xlane.f32.xlu0 %v2432_v49  ;;  %v2429_v8 = vsel %vm606_vm5, %v2421_v7, -inf }
 0xf91   :  { %2430 = vmax.xlane.f32.xlu1 %v2429_v8 }
 0xf94   :  { %v3897_v9 = vpop.f32.mrb[18].mxu1 }
 0xf95   :  { %v2616_v50 = vadd.f32 %v3897_v9, %v4744_v56  ;;  %v2610_v10 = vpop.f32.mrb[19].mxu1 }
 0xf96   :  { %v2611_v15 = vadd.f32 %v2610_v10, %v4739_v53 }
 0xf97   :  { %v2622_v11 = vsel %vm606_vm5, %v2616_v50, -inf }
 0xf98   :  { %2623 = vmax.xlane.f32.xlu0 %v2622_v11  ;;  %v2619_v14 = vsel %vm606_vm5, %v2611_v15, -inf }
 0xf99   :  { %2620 = vmax.xlane.f32.xlu1 %v2619_v14 }
0x1015   :  { %v2165_v17 = vpop.xlane.xlu0 %2164 }
0x1016   :  { %v2167_v28 = vsub.f32 %v2157_v63, %v2165_v17  ;;  %v2162_v19 = vpop.xlane.xlu1 %2161 }
0x1017   :  { %v2166_v20 = vsub.f32 %v2152_v34, %v2162_v19  ;;  %v3429_v19 = vld [vmem:[%s5235_s14 + $0x28] sm:$0xff] }
0x1018   :  { %v2170_v21 = vmul.f32 1.442695, %v2167_v28  ;;  %v3428_v28 = vld [vmem:[%s5235_s14 + $0x20] sm:$0xff] }
0x1019   :  { %v2168_v23 = vmul.f32 1.442695, %v2166_v20  ;;  %v2058_v51 = vpop.xlane.xlu0 %2057 }
0x101a   :  { %4303 = vpow2.f32 %v2170_v21  ;;  %v2060_v24 = vsub.f32 %v2050_v27, %v2058_v51  ;;  %v2055_v30 = vpop.xlane.xlu1 %2054 }
0x101b   :  { %4305 = vpow2.f32 %v2168_v23  ;;  %v2059_v56 = vsub.f32 %v2045_v25, %v2055_v30  ;;  %v4172_v23 = vpack.c.bf16 %v3429_v19, %v3428_v28  ;;  %v3431_v30 = vld [vmem:[%s5235_s14 + $0x38] sm:$0xff]  ;;  %v3456_v19 = vld [vmem:[%s5241_s20 + $0xb0] sm:$0xff] }
0x101c   :  { %v2063_v31 = vmul.f32 1.442695, %v2060_v24  ;;  %v3430_v24 = vld [vmem:[%s5235_s14 + $0x30] sm:$0xff] }
0x101d   :  { %v2061_v53 = vmul.f32 1.442695, %v2059_v56  ;;  %v2434_v32 = vpop.xlane.xlu0 %2433 }
0x101e   :  { %4307 = vpow2.f32 %v2063_v31  ;;  %v2436_v58 = vsub.f32 %v2426_v5, %v2434_v32  ;;  %v2431_v59 = vpop.xlane.xlu1 %2430  ;;  %v4176_v31 = vpack.c.bf16 %v3431_v30, %v3430_v24  ;;  %v3460_v24 = vld [vmem:[%s5241_s20 + $0xd0] sm:$0xff]  ;;  %v3461_v30 = vld [vmem:[%s5241_s20 + $0xd8] sm:$0xff] }
0x101f   :  { %4309 = vpow2.f32 %v2061_v53  ;;  %v2435_v33 = vsub.f32 %v2421_v7, %v2431_v59 }
0x1020   :  { %v2439_v36 = vmul.f32 1.442695, %v2436_v58  ;;  %v3435_v58 = vld [vmem:[%s5236_s15 + $0x1] ss:$0 sm:$0xff]  ;;  %s5281_s15 = sld [smem:[#allocation9_spill]] }
0x1021   :  { %v2437_v37 = vmul.f32 1.442695, %v2435_v33 }
0x1022   :  { %4311 = vpow2.f32 %v2439_v36 }
0x1023   :  { %4313 = vpow2.f32 %v2437_v37 }
0x1024   :  { %v4304_v38 = vpop.eup %4303 }
0x1025   :  { %v4306_v39 = vpop.eup %4305  ;;  %v2624_v40 = vpop.xlane.xlu0 %2623  ;;  %v2175_v41 = vsel %vm606_vm5, %v4304_v38, 0.0 }
0x1026   :  { %v2626_v42 = vsub.f32 %v2616_v50, %v2624_v40  ;;  %2176 = vadd.xlane.f32.xlu0 %v2175_v41  ;;  %v2621_v43 = vpop.xlane.xlu1 %2620  ;;  %v2172_v44 = vsel %vm606_vm5, %v4306_v39, 0.0 }
0x1027   :  { %v2625_v45 = vsub.f32 %v2611_v15, %v2621_v43  ;;  %2173 = vadd.xlane.f32.xlu1 %v2172_v44 }
0x1028   :  { %v4308_v46 = vpop.eup %4307  ;;  %v2629_v47 = vmul.f32 1.442695, %v2626_v42 }
0x1029   :  { %v4310_v48 = vpop.eup %4309  ;;  %v2627_v52 = vmul.f32 1.442695, %v2625_v45  ;;  %v2068_v13 = vsel %vm606_vm5, %v4308_v46, 0.0 }
0x102a   :  { %4315 = vpow2.f32 %v2629_v47  ;;  %2069 = vadd.xlane.f32.xlu0 %v2068_v13  ;;  %v2065_v57 = vsel %vm606_vm5, %v4310_v48, 0.0  ;;  %v3441_v13 = vld [vmem:[%s5239_s18 + $0x28] sm:$0xff] }
0x102b   :  { %4317 = vpow2.f32 %v2627_v52  ;;  %2066 = vadd.xlane.f32.xlu1 %v2065_v57  ;;  %v3440_v52 = vld [vmem:[%s5239_s18 + $0x20] sm:$0xff] }
0x102c   :  { %v4312_v60 = vpop.eup %4311  ;;  %v4180_v57 = vpack.c.bf16 %v3441_v13, %v3440_v52 }
0x102d   :  { %v4314_v61 = vpop.eup %4313  ;;  %v2444_v62 = vsel %vm606_vm5, %v4312_v60, 0.0 }
0x102e   :  { %2445 = vadd.xlane.f32.xlu0 %v2444_v62  ;;  %v2441_v63 = vsel %vm606_vm5, %v4314_v61, 0.0  ;;  %4181 = vmatprep.subr.bf16.mxu1 %v4180_v57 }
0x102f   :  { %2442 = vadd.xlane.f32.xlu1 %v2441_v63  ;;  %4183 = vmatpush3.bf16.msra.mxu1 %v4180_v57 }
0x1034   :  { %v4316_v0 = vpop.eup %4315 }
0x1035   :  { %v4318_v1 = vpop.eup %4317  ;;  %v2634_v34 = vsel %vm606_vm5, %v4316_v0, 0.0 }
0x1036   :  { %2635 = vadd.xlane.f32.xlu0 %v2634_v34  ;;  %v2631_v27 = vsel %vm606_vm5, %v4318_v1, 0.0 }
0x1037   :  { %2632 = vadd.xlane.f32.xlu1 %v2631_v27 }
0x10b3   :  { %v2177_v26 = vpop.xlane.xlu0 %2176 }
0x10b4   :  { %4319 = vrcp.f32 %v2177_v26  ;;  %v2174_v25 = vpop.xlane.xlu1 %2173 }
0x10b5   :  { %4321 = vrcp.f32 %v2174_v25 }
0x10b7   :  { %v2070_v35 = vpop.xlane.xlu0 %2069 }
0x10b8   :  { %v2067_v2 = vpop.xlane.xlu1 %2066 }
0x10b9   :  { %4323 = vrcp.f32 %v2067_v2  ;;  %v3438_v2 = vld [vmem:[%s5237_s16 + $0x1] ss:$0 sm:$0xff]  ;;  %s4351_s16 = scalar_lea.vmem %s3295_s2, 256 }
0x10ba   :  { %4325 = vrcp.f32 %v2070_v35  ;;  %p4352_p0 = scmp.ne.s32.totalorder %s3295_s2, %s4351_s16  ;;  %p4357_p2 = scmp.lt.s32.totalorder %s4351_s16, %s4351_s16 }
0x10bb   :  { %v2446_v49 = vpop.xlane.xlu0 %2445 }
0x10bc   :  { %v2443_v3 = vpop.xlane.xlu1 %2442  ;;  %p4358_p3 = por %p4357_p2, %p4356_p1 }
0x10bd   :  { %4327 = vrcp.f32 %v2443_v3 }
0x10be   :  { %v4320_v4 = vpop.eup %4319  ;;  %4329 = vrcp.f32 %v2446_v49  ;;  %p4359_p4 = pnand %p4358_p3, %p4352_p0 }
0x10bf   :  { %v4322_v5 = vpop.eup %4321  ;;  %v2181_v7 = vmul.f32 %v4320_v4, %v4304_v38 }
0x10c0   :  { %v2180_v6 = vmul.f32 %v4322_v5, %v4306_v39  ;;  %v3439_v5 = vld [vmem:[%s5238_s17 + $0x1] ss:$0 sm:$0xff] }
0x10c2   :  { %3867 = vmatprep.mubr.msk.f32.mxu0 %vm606_vm5, %v2180_v6 }
0x10c3   :  { %v4324_v8 = vpop.eup %4323  ;;  %3868 = vmatmul.mubr.msk.f32.vlgmr.msra.gmra.mrb[18].mxu0 %vm606_vm5, %v2181_v7  ;;  %v2636_v14 = vpop.xlane.xlu0 %2635 }
0x10c4   :  { %4151 = vmatpush3.bf16.msra.mxu0 %v4998_v54  ;;  %v2633_v9 = vpop.xlane.xlu1 %2632  ;;  %v2073_v50 = vmul.f32 %v4324_v8, %v4310_v48  ;;  %v4326_v10 = vpop.eup %4325 }
0x10c5   :  { %4159 = vmatprep.subr.bf16.mxu0 %v5000_v55  ;;  %4331 = vrcp.f32 %v2633_v9  ;;  %v2074_v11 = vmul.f32 %v4326_v10, %v4308_v46  ;;  %v3450_v9 = vld [vmem:[%s5241_s20 + $0x80] sm:$0xff] }
0x10c6   :  { %3874 = vmatprep.mubr.msk.f32.mxu0 %vm606_vm5, %v2073_v50  ;;  %4333 = vrcp.f32 %v2636_v14  ;;  %v3451_v50 = vld [vmem:[%s5241_s20 + $0x88] sm:$0xff] }
0x10c7   :  { %v4328_v15 = vpop.eup %4327  ;;  %v4188_v10 = vpack.c.bf16 %v3451_v50, %v3450_v9 }
0x10c8   :  { %v2449_v17 = vmul.f32 %v4328_v15, %v4314_v61  ;;  %v4330_v54 = vpop.eup %4329  ;;  %v3443_v61 = vld [vmem:[%s5239_s18 + $0x38] sm:$0xff]  ;;  %v3452_v15 = vld [vmem:[%s5241_s20 + $0x90] sm:$0xff] }
0x10c9   :  { %v2450_v21 = vmul.f32 %v4330_v54, %v4312_v60  ;;  %v3442_v60 = vld [vmem:[%s5239_s18 + $0x30] sm:$0xff]  ;;  %v3455_v54 = vld [vmem:[%s5241_s20 + $0xa8] sm:$0xff] }
0x10ca   :  { %v4184_v62 = vpack.c.bf16 %v3443_v61, %v3442_v60  ;;  %v3467_v61 = vld [vmem:[%s5242_s21 + $0x1] ss:$0 sm:$0xff] }
0x10cb   :  { %3875 = vmatmul.mubr.msk.f32.vlgmr.msra.gmra.mrb[18].mxu0 %vm606_vm5, %v2074_v11  ;;  %v3453_v11 = vld [vmem:[%s5241_s20 + $0x98] sm:$0xff] }
0x10cc   :  { %4161 = vmatpush3.bf16.msra.mxu0 %v5000_v55  ;;  %3888 = vmatprep.mubr.msk.f32.mxu0 %vm606_vm5, %v2449_v17  ;;  %v4192_v14 = vpack.c.bf16 %v3453_v11, %v3452_v15  ;;  %v3454_v17 = vld [vmem:[%s5241_s20 + $0xa0] sm:$0xff] }
0x10cd   :  { %4169 = vmatprep.subr.bf16.mxu0 %v5005_v12  ;;  %4185 = vmatprep.subr.bf16.mxu1 %v4184_v62  ;;  %v4196_v28 = vpack.c.bf16 %v3455_v54, %v3454_v17  ;;  %v3468_v54 = vld [vmem:[%s5243_s22] ss:$0 sm:$0xff] }
0x10ce   :  { %4187 = vmatpush3.bf16.msra.mxu1 %v4184_v62 }
0x10cf   :  { %v4332_v20 = vpop.eup %4331 }
0x10d0   :  { %v2639_v51 = vmul.f32 %v4332_v20, %v4318_v1  ;;  %v4334_v55 = vpop.eup %4333  ;;  %v3457_v20 = vld [vmem:[%s5241_s20 + $0xb8] sm:$0xff] }
0x10d1   :  { %v2640_v56 = vmul.f32 %v4334_v55, %v4316_v0 }
0x10d3   :  { %3889 = vmatmul.mubr.msk.f32.vlgmr.msra.gmra.mrb[18].mxu0 %vm606_vm5, %v2450_v21  ;;  %v4200_v21 = vpack.c.bf16 %v3457_v20, %v3456_v19 }
0x10d4   :  { %4171 = vmatpush3.bf16.msra.mxu0 %v5005_v12  ;;  %3902 = vmatprep.mubr.msk.f32.mxu0 %vm606_vm5, %v2639_v51  ;;  %v3459_v51 = vld [vmem:[%s5241_s20 + $0xc8] sm:$0xff] }
0x10d5   :  { %4173 = vmatprep.subr.bf16.mxu0 %v4172_v23 }
0x10db   :  { %3903 = vmatmul.mubr.msk.f32.vlgmr.msra.gmra.mrb[18].mxu0 %vm606_vm5, %v2640_v56  ;;  %v4208_v56 = vpack.c.bf16 %v3461_v30, %v3460_v24 }
0x10dc   :  { %4175 = vmatpush3.bf16.msra.mxu0 %v4172_v23  ;;  %v3458_v23 = vld [vmem:[%s5241_s20 + $0xc0] sm:$0xff] }
0x10dd   :  { %4177 = vmatprep.subr.bf16.mxu0 %v4176_v31  ;;  %v4204_v55 = vpack.c.bf16 %v3459_v51, %v3458_v23 }
0x10e0   :  { %4179 = vmatpush3.bf16.msra.mxu0 %v4176_v31  ;;  %v3462_v31 = vld [vmem:[%s5241_s20 + $0xe0] sm:$0xff] }
0x10e1   :  { %4189 = vmatprep.subr.bf16.mxu0 %v4188_v10 }
0x11ae   :  { %v3904_v12 = vpop.f32.mrb[18].mxu0 }
0x11af   :  { %v2715_v53 = vpop.f32.mrb[19].mxu0 }
0x11b0   :  { %3913 = vmatprep.mubr.msk.f32.mxu0 %vm203_vm3, %v2715_v53 }
0x11b1   :  { %3914 = vmatmul.mubr.msk.f32.vlgmr.msra.gmra.mrb[20].mxu0 %vm203_vm3, %v3904_v12  ;;  %v3463_v12 = vld [vmem:[%s5241_s20 + $0xe8] sm:$0xff] }
0x11b2   :  { %4191 = vmatpush3.bf16.msra.mxu0 %v4188_v10  ;;  %v4212_v53 = vpack.c.bf16 %v3463_v12, %v3462_v31  ;;  %v3211_v31 = vld [vmem:[%s5245_s24 + $0x8] sm:$0xff] }
0x11b3   :  { %4193 = vmatprep.subr.bf16.mxu0 %v4192_v14 }
0x11b6   :  { %4195 = vmatpush3.bf16.msra.mxu0 %v4192_v14 }
0x11b7   :  { %4197 = vmatprep.subr.bf16.mxu0 %v4196_v28 }
0x11ba   :  { %4199 = vmatpush3.bf16.msra.mxu0 %v4196_v28 }
0x11bb   :  { %4201 = vmatprep.subr.bf16.mxu0 %v4200_v21 }
0x11be   :  { %4203 = vmatpush3.bf16.msra.mxu0 %v4200_v21  ;;  %v3469_v21 = vld [vmem:[%s5244_s23] ss:$0 sm:$0xff] }
0x11bf   :  { %4205 = vmatprep.subr.bf16.mxu0 %v4204_v55 }
0x11c2   :  { %4207 = vmatpush3.bf16.msra.mxu0 %v4204_v55 }
0x11c3   :  { %4209 = vmatprep.subr.bf16.mxu0 %v4208_v56 }
0x11c6   :  { %4211 = vmatpush3.bf16.msra.mxu0 %v4208_v56  ;;  %v3210_v56 = vld [vmem:[%s5245_s24] sm:$0xff] }
0x11c7   :  { %4213 = vmatprep.subr.bf16.mxu0 %v4212_v53 }
0x11ca   :  { %4215 = vmatpush3.bf16.msra.mxu0 %v4212_v53 }
0x1284   :  { %v3915_v32 = vpop.f32.mrb[20].mxu0 }
0x1285   :  { %v2813_v59 = vadd.f32 %v3915_v32, %v4902_v29  ;;  %v2803_v33 = vpop.f32.mrb[21].mxu0  ;;  %v3464_v32 = vld [vmem:[%s5241_s20 + $0xf0] sm:$0xff] }
0x1286   :  { %v2812_v36 = vadd.f32 %v2803_v33, %v4904_v22  ;;  %v3445_v33 = vld [vmem:[%s5240_s19 + $0x1] ss:$0 sm:$0xff] }
0x1287   :  { %v5074_v37 = vadd.f32 %v3435_v58, %v2813_v59 }
0x1288   :  { %v5076_v38 = vadd.f32 %v3435_v58, %v2812_v36  ;;  %v3465_v58 = vld [vmem:[%s5241_s20 + $0xf8] sm:$0xff] }
0x1289   :  { %v2831_v39 = vsel %vm203_vm3, %v5074_v37, 0.0  ;;  %v4216_v59 = vpack.c.bf16 %v3465_v58, %v3464_v32  ;;  %v4224_v32 = vpack.c.bf16 %v3211_v31, %v3210_v56  ;;  %v3213_v58 = vld [vmem:[%s5245_s24 + $0x18] sm:$0xff] }
0x128a   :  { %2832 = vadd.xlane.f32.xlu0 %v2831_v39  ;;  %v2828_v40 = vsel %vm203_vm3, %v5076_v38, 0.0 }
0x128b   :  { %2829 = vadd.xlane.f32.xlu1 %v2828_v40  ;;  %4217 = vmatprep.subr.bf16.mxu0 %v4216_v59 }
0x128c   :  { %4219 = vmatpush3.bf16.msra.mxu0 %v4216_v59 }
0x1317   :  { %v2833_v41 = vpop.xlane.xlu0 %2832 }
0x1318   :  { %v2835_v42 = vmul.f32 0.03125, %v2833_v41  ;;  %v2830_v43 = vpop.xlane.xlu1 %2829 }
0x1319   :  { %v2834_v44 = vmul.f32 0.03125, %v2830_v43 }
0x131a   :  { %v2837_v29 = vsub.f32 %v5074_v37, %v2835_v42 }
0x131b   :  { %v2836_v22 = vsub.f32 %v5076_v38, %v2834_v44 }
0x131c   :  { %v2839_v45 = vmul.f32 %v2837_v29, %v2837_v29 }
0x131d   :  { %v2838_v46 = vmul.f32 %v2836_v22, %v2836_v22 }
0x131e   :  { %v2843_v47 = vsel %vm203_vm3, %v2839_v45, 0.0 }
0x131f   :  { %2844 = vadd.xlane.f32.xlu0 %v2843_v47  ;;  %v2840_v48 = vsel %vm203_vm3, %v2838_v46, 0.0 }
0x1320   :  { %2841 = vadd.xlane.f32.xlu1 %v2840_v48 }
0x13ac   :  { %v2845_v63 = vpop.xlane.xlu0 %2844 }
0x13ad   :  { %v2847_v0 = vmul.f32 0.03125, %v2845_v63  ;;  %v2842_v1 = vpop.xlane.xlu1 %2841 }
0x13ae   :  { %v2846_v34 = vmul.f32 0.03125, %v2842_v1 }
0x13af   :  { %v2849_v27 = vadd.f32 1e-05, %v2847_v0 }
0x13b0   :  { %v2848_v26 = vadd.f32 1e-05, %v2846_v34 }
0x13b1   :  { %4335 = vrsqrt.f32 %v2849_v27 }
0x13b2   :  { %4337 = vrsqrt.f32 %v2848_v26 }
0x13bb   :  { %v4336_v25 = vpop.eup %4335 }
0x13bc   :  { %v4338_v35 = vpop.eup %4337  ;;  %v2853_v3 = vmul.f32 %v4336_v25, %v2837_v29 }
0x13bd   :  { %v2852_v4 = vmul.f32 %v4338_v35, %v2836_v22 }
0x13be   :  { %v2861_v6 = vmul.f32 %v3438_v2, %v2853_v3 }
0x13bf   :  { %v2860_v7 = vmul.f32 %v3438_v2, %v2852_v4 }
0x13c0   :  { %v2869_v8 = vadd.f32 %v3439_v5, %v2861_v6 }
0x13c1   :  { %v2868_v49 = vadd.f32 %v3439_v5, %v2860_v7 }
0x13c3   :  { %3924 = vmatprep.mubr.msk.f32.mxu1 %vm203_vm3, %v2868_v49  ;;  %v3130_v49 = vld [vmem:[%s5281_s15] sm:$0x3] }
0x13c4   :  { %3925 = vmatmul.mubr.msk.f32.vlgmr.msra.gmra.mrb[20].mxu1 %vm203_vm3, %v2869_v8  ;;  %v4401_v8 = vmov 0.0|0.0  }
0x13c5   :  { %4220 = vmatprep.subr.bf16.mxu1 %v4401_v8  ;;  %3966 = vmatprep.mubr.msk.f32.mxu1 %vm4402_vm6, %v4400_v18 }
0x1497   :  { %v3926_v36 = vpop.f32.mrb[20].mxu1 }
0x1498   :  { %v2961_v39 = vadd.f32 %v3926_v36, %v3445_v33  ;;  %v2955_v40 = vpop.f32.mrb[21].mxu1 }
0x1499   :  { %v2956_v41 = vadd.f32 %v3445_v33, %v2955_v40 }
0x149a   :  { %v3449_v42 = vmul.f32 -1.702, %v2961_v39 }
0x149b   :  { %v3448_v43 = vmul.f32 -1.702, %v2956_v41 }
0x149c   :  { %v2970_v44 = vmul.f32 1.442695, %v3449_v42 }
0x149d   :  { %v2968_v29 = vmul.f32 1.442695, %v3448_v43 }
0x149e   :  { %4339 = vpow2.f32 %v2970_v44 }
0x149f   :  { %4341 = vpow2.f32 %v2968_v29 }
0x14a8   :  { %v4340_v22 = vpop.eup %4339 }
0x14a9   :  { %v4342_v45 = vpop.eup %4341  ;;  %v2973_v46 = vadd.f32 1.0, %v4340_v22 }
0x14aa   :  { %v2972_v47 = vadd.f32 1.0, %v4342_v45 }
0x14ab   :  { %4343 = vrcp.f32 %v2973_v46 }
0x14ac   :  { %4345 = vrcp.f32 %v2972_v47 }
0x14b5   :  { %v4344_v48 = vpop.eup %4343 }
0x14b6   :  { %v4346_v52 = vpop.eup %4345  ;;  %v2979_v57 = vmul.f32 %v4344_v48, %v2961_v39 }
0x14b7   :  { %v2978_v13 = vmul.f32 %v4346_v52, %v2956_v41 }
0x14b9   :  { %3959 = vmatprep.mubr.f32.mxu0 %v2978_v13 }
0x14ba   :  { %3960 = vmatmul.mubr.f32.vlgmr.msra.gmra.mrb[22].mxu0 %v2979_v57 }
0x158d   :  { %v3961_v60 = vpop.f32.mrb[22].mxu0 }
0x158e   :  { %v3073_v62 = vadd.f32 %v3961_v60, %v5074_v37  ;;  %v3063_v63 = vpop.f32.mrb[23].mxu0 }
0x158f   :  { %v3072_v0 = vadd.f32 %v3063_v63, %v5076_v38 }
0x1590   :  { %v3083_v1 = vadd.f32 %v3467_v61, %v3073_v62 }
0x1591   :  { %v3082_v34 = vadd.f32 %v3467_v61, %v3072_v0 }
0x1592   :  { %v3089_v27 = vsel %vm203_vm3, %v3083_v1, 0.0 }
0x1593   :  { %3090 = vadd.xlane.f32.xlu0 %v3089_v27  ;;  %v3086_v26 = vsel %vm203_vm3, %v3082_v34, 0.0 }
0x1594   :  { %3087 = vadd.xlane.f32.xlu1 %v3086_v26 }
0x1620   :  { %v3091_v25 = vpop.xlane.xlu0 %3090 }
0x1621   :  { %v3093_v2 = vmul.f32 0.03125, %v3091_v25  ;;  %v3088_v35 = vpop.xlane.xlu1 %3087 }
0x1622   :  { %v3092_v3 = vmul.f32 0.03125, %v3088_v35 }
0x1623   :  { %v3095_v4 = vsub.f32 %v3083_v1, %v3093_v2 }
0x1624   :  { %v3094_v5 = vsub.f32 %v3082_v34, %v3092_v3 }
0x1625   :  { %v3097_v6 = vmul.f32 %v3095_v4, %v3095_v4 }
0x1626   :  { %v3096_v7 = vmul.f32 %v3094_v5, %v3094_v5 }
0x1627   :  { %v3101_v37 = vsel %vm203_vm3, %v3097_v6, 0.0 }
0x1628   :  { %3102 = vadd.xlane.f32.xlu0 %v3101_v37  ;;  %v3098_v38 = vsel %vm203_vm3, %v3096_v7, 0.0 }
0x1629   :  { %3099 = vadd.xlane.f32.xlu1 %v3098_v38 }
0x163a   :  { %3132 = vperm.xlu1 %4250, %v3130_v49  }
0x16b5   :  { %v3103_v9 = vpop.xlane.xlu0 %3102 }
0x16b6   :  { %v3105_v50 = vmul.f32 0.03125, %v3103_v9  ;;  %v3100_v10 = vpop.xlane.xlu1 %3099 }
0x16b7   :  { %v3104_v15 = vmul.f32 0.03125, %v3100_v10 }
0x16b8   :  { %v3107_v11 = vadd.f32 1e-05, %v3105_v50 }
0x16b9   :  { %v3106_v14 = vadd.f32 1e-05, %v3104_v15 }
0x16ba   :  { %4347 = vrsqrt.f32 %v3107_v11  ;;  %v3133_v55 = vpop.permute.xlu1 %3132 }
0x16bb   :  { %4349 = vrsqrt.f32 %v3106_v14  ;;  %vm3134_vm7 = vcmp.eq.s32.totalorder %v4572_v16, %v3133_v55  ;;  %v3212_v16 = vld [vmem:[%s5245_s24 + $0x10] sm:$0xff] }
0x16bc   :  { %v3470_v53 = vsel %vm3134_vm7, 1.0, %v4400_v18  ;;  %v4227_v59 = vpack.c.bf16 %v3213_v58, %v3212_v16 }
0x16c4   :  { %v4348_v17 = vpop.eup %4347 }
0x16c5   :  { %v4350_v28 = vpop.eup %4349  ;;  %v3111_v19 = vmul.f32 %v4348_v17, %v3095_v4 }
0x16c6   :  { %v3110_v20 = vmul.f32 %v4350_v28, %v3094_v5 }
0x16c7   :  { %v3119_v23 = vmul.f32 %v3468_v54, %v3111_v19 }
0x16c8   :  { %v3118_v51 = vmul.f32 %v3468_v54, %v3110_v20 }
0x16c9   :  { %v3127_v24 = vadd.f32 %v3469_v21, %v3119_v23 }
0x16ca   :  { %v3126_v30 = vadd.f32 %v3469_v21, %v3118_v51 }
0x16cb   :  { %3129 = vst.msk [vmem:[#allocation2 + $0x8] sm:$0xff] %vm203_vm3, %v3127_v24 }
0x16cc   :  { %v4221_v12 = vpack.c.bf16 %v3127_v24, %v3126_v30  ;;  %3128 = vst.msk [vmem:[#allocation2] sm:$0xff] %vm203_vm3, %v3126_v30 }
0x16ce   :  { %4222 = vmatpush3.bf16.msra.mxu1 %v4221_v12 }
0x16cf   :  { %4223 = vmatprep.subr.bf16.mxu1 %v4401_v8 }
0x16d1   :  { %3967 = vmatmul.mubr.msk.f32.vlgmr.msra.gmra.mrb[22].mxu1 %vm606_vm5, %v3470_v53 }
0x16d2   :  { %4225 = vmatpush3.bf16.msra.mxu1 %v4224_v32  ;;  %3977 = vmatprep.mubr.msk.f32.mxu1 %vm4402_vm6, %v4400_v18 }
0x16d3   :  { %4226 = vmatprep.subr.bf16.mxu1 %v4401_v8 }
0x16d6   :  { %4228 = vmatpush3.bf16.msra.mxu1 %v4227_v59 }
0x17a4   :  { %v3206_v33 = vpop.f32.mrb[22].mxu1 }
0x17a5   :  { %v3968_v36 = vpop.f32.mrb[23].mxu1  ;;  %3978 = vmatmul.mubr.msk.f32.vlgmr.msra.gmra.mrb[24].mxu1 %vm203_vm3, %v3206_v33 }
0x17a6   :  { %4362 = shalt.err (!%p4359_p4)
}
0x17a7   :  { %s4363_s17 = scalar_lea.hbm %s5246_s25, 256 }
0x17a8   :  { %p4364_p5 = scmp.ne.s32.totalorder %s5246_s25, %s4363_s17  ;;  %p4367_p6 = scmp.lt.u32.totalorder %s4363_s17, %s5246_s25 }
0x17aa   :  { %p4369_p7 = pnand %p4367_p6, %p4364_p5 }
0x17ac   :  { %4372 = shalt.err (!%p4369_p7)
}
0x17ad   :  { %s4404_s9 = smov 128   ;;  %s4405_s8 = smov 8   ;;  %vm3287_vm8 = vcmask 254976  }
0x17ae   :  { %3300 = dma.vmem_to_hbm [thread:$0]  %s3295_s2, 256, %s5246_s25, [#allocation3], %s4404_s9, %s4404_s9, %s4405_s8  }
0x17af   :  { %s4406_s21 = smov [#allocation4]  }
0x17b0   :  { %s3307_s14 = sshll.u32 %s4406_s21, 4  ;;  %s3308_s14 = int_to_ptr.vmem [resolvable:$true] %s3307_s14 }
0x17b1   :  { %s4373_s15 = scalar_lea.vmem %s3308_s14, 32  ;;  %p4378_p9 = scmp.lt.s32.totalorder %s3308_s14, %s3308_s14 }
0x17b2   :  { %p4374_p8 = scmp.ne.s32.totalorder %s3308_s14, %s4373_s15  ;;  %p4379_p10 = scmp.lt.s32.totalorder %s4373_s15, %s4373_s15 }
0x17b4   :  { %p4380_p11 = por %p4379_p10, %p4378_p9 }
0x17b6   :  { %p4381_p12 = pnand %p4380_p11, %p4374_p8 }
0x1878   :  { %v3283_v18 = vpop.f32.mrb[24].mxu1 }
0x1879   :  { %3288 = vst.msk [vmem:[#allocation4] sm:$0x3] %vm3287_vm8, %v3283_v18  ;;  %v3979_v39 = vpop.f32.mrb[25].mxu1 }
0x187a   :  { %4384 = shalt.err (!%p4381_p12)
}
0x187b   :  { %s4385_s7 = scalar_lea.hbm %s5247_s26, 32 }
0x187c   :  { %p4386_p13 = scmp.ne.s32.totalorder %s5247_s26, %s4385_s7  ;;  %p4389_p0 = scmp.lt.u32.totalorder %s4385_s7, %s5247_s26 }
0x187e   :  { %p4391_p1 = pnand %p4389_p0, %p4386_p13 }
0x1880   :  { %4394 = shalt.err (!%p4391_p1)
}
0x1881   :  { %3310 = dma.vmem_to_hbm [thread:$0]  %s3308_s14, 32, %s5247_s26, [#allocation5]  }
0x1882   :  { %4395 = dma.done.wait [#allocation3], 256  }
0x1883   :  { %4396 = vsyncadd [#allocation3], 4294967040 }
0x1884   :  { %4397 = dma.done.wait [#allocation5], 32  }
0x1885   :  { %4398 = vsyncadd [#allocation5], 4294967264 }
0x1886   :  { %3317 = vsyncpa [#allocation3], 1 }
0x1887   :  { %3318 = vsyncpa [#allocation5], 1 }

</bundles_post_ra>
